<compile_context>
chip_gen: v5e
topology: v5e:2x2
jax: 0.10.0
libtpu: 0.0.40
codegen_flags: <defaults>
</compile_context>

<pallas_src>
from functools import partial

import jax
import jax.numpy as jnp
from jax.experimental import pallas as pl
from jax.experimental.pallas import tpu as pltpu


def connector_kernel(feat_ref, qwk_ref, qbk_ref, mask_ref, slat_ref, vlat_ref,
                     wd_ref, bd_ref, wv_ref, bv_ref, wo_ref, bo_ref,
                     out_ref, ctx_ref,
                     *, num_heads, head_dim, latent_len, exp_dtype):
    f32 = jnp.float32
    H, Dh, L = num_heads, head_dim, latent_len
    cdt = feat_ref.dtype                       # compute dtype (bf16)

    feats = feat_ref[...]                      # (S_pad, V)  (batch dim squeezed)

    # --- dense projection: vision hidden -> text embed dim (f32 accumulate) ---
    hs = jnp.dot(feats, wd_ref[...], preferred_element_type=f32) + bd_ref[...]
    hs_c = hs.astype(cdt)                      # (S_pad, E)

    # --- image-token attention scores for ALL heads, one full-width NT matmul ---
    #   s_img[(h,l), s] = q_h[h,l,:] . (W_k^T hs[s] + b_k)   (q already scaled)
    # qwk = fold(q, W_k), qbk = fold(q, b_k), mask = additive 0 / -1e30 pad row.
    s_img = (jax.lax.dot_general(
                 qwk_ref[...], hs_c,
                 dimension_numbers=(((1,), (1,)), ((), ())),   # contract on E (NT)
                 preferred_element_type=f32)
             + qbk_ref[...] + mask_ref[...])                   # (H*L, S_pad)
    s_lat = slat_ref[...]                                      # (H*L, L) precomputed

    # --- split softmax over [image tokens | latent tokens] (no lane concat) ---
    m = jnp.maximum(jnp.max(s_img, axis=-1, keepdims=True),
                    jnp.max(s_lat, axis=-1, keepdims=True))    # (H*L, 1)
    p_img = jnp.exp((s_img - m).astype(exp_dtype))             # bf16 exp on v6e/v7x
    p_lat = jnp.exp((s_lat - m).astype(exp_dtype))
    denom = (jnp.sum(p_img.astype(f32), axis=-1, keepdims=True)
             + jnp.sum(p_lat.astype(f32), axis=-1, keepdims=True))
    inv = pl.reciprocal(denom, approx=True)                    # (H*L, 1) EUP slot
    p_img_c = p_img.astype(cdt)                                # unnormalised probs
    p_lat_c = p_lat.astype(cdt)
    # eval-mode semantics: attention dropout is the identity.

    # --- image-token value projection (full-width); latent values precomputed ---
    v_img = jnp.dot(hs_c, wv_ref[...], preferred_element_type=f32) + bv_ref[...]
    v_img_c = v_img.astype(cdt)                                # (S_pad, E)
    v_lat_c = vlat_ref[...]                                    # (L, E)

    # --- per-head context, processed in head pairs so every ctx store covers a
    #     2*Dh lane slab (128-lane aligned at full Kosmos-2 size); the deferred
    #     softmax normalisation (1/denom) is folded into the small ctx tile ---
    pair = 2 if H % 2 == 0 else 1
    for h0 in range(0, H, pair):
        parts = []
        for h in range(h0, h0 + pair):
            r0, c0 = h * L, h * Dh
            ctx_h = (jnp.dot(p_img_c[r0:r0 + L, :], v_img_c[:, c0:c0 + Dh],
                             preferred_element_type=f32)
                     + jnp.dot(p_lat_c[r0:r0 + L, :], v_lat_c[:, c0:c0 + Dh],
                               preferred_element_type=f32))    # (L, Dh) f32
            parts.append(ctx_h * inv[r0:r0 + L, :])
        slab = parts[0] if pair == 1 else jnp.concatenate(parts, axis=-1)
        ctx_ref[:, h0 * Dh:(h0 + pair) * Dh] = slab

    # --- output projection (single full-width matmul) ---
    ctx = ctx_ref[...].astype(cdt)                             # (L, E)
    out = jnp.dot(ctx, wo_ref[...], preferred_element_type=f32) + bo_ref[...]
    out_ref[...] = out.astype(out_ref.dtype)


def _bf16_eup_supported():
    """bf16 EUP transcendentals exist on v6e / v7x; keep f32 exp on v5e and older."""
    try:
        kind = jax.devices()[0].device_kind.lower()
    except Exception:
        return False
    return ("v6" in kind) or ("v7" in kind)


def _vmem_capacity_bytes():
    try:
        return int(pltpu.get_tpu_info().vmem_capacity_bytes)
    except Exception:
        return 64 * 1024 * 1024      # conservative: v7x per-TC VMEM


def connector_forward(features, params, num_heads, *, compute_dtype=jnp.bfloat16):
    """Pallas implementation of Kosmos2ImageToTextConnector.forward (eval mode)."""
    B, S, V = features.shape
    L, E = params["latent_query"].shape
    H = num_heads
    Dh = E // H
    scaling = Dh ** (-0.5)
    f32 = jnp.float32
    cdt = compute_dtype

    # ---- cast params to the compute dtype (bf16 weights -> native MXU path) ----
    lq_c = params["latent_query"].astype(cdt)
    w_d_c = params["w_dense"].astype(cdt)
    w_q_c = params["w_q"].astype(cdt)
    w_k_c = params["w_k"].astype(cdt)
    w_v_c = params["w_v"].astype(cdt)
    w_o_c = params["w_o"].astype(cdt)
    b_d = params["b_dense"].astype(f32)
    b_q = params["b_q"].astype(f32)
    b_k = params["b_k"].astype(f32)
    b_v = params["b_v"].astype(f32)
    b_o = params["b_o"].astype(f32)

    # ---- hoist ALL batch-invariant latent-query work out of the grid loop ----
    lq = lq_c.astype(f32)
    q_lat = (lq @ w_q_c.astype(f32) + b_q) * scaling           # (L, E), scaling folded
    k_lat = lq @ w_k_c.astype(f32) + b_k                       # (L, E)
    v_lat = lq @ w_v_c.astype(f32) + b_v                       # (L, E)

    q_h = q_lat.reshape(L, H, Dh)
    w_k_h = w_k_c.astype(f32).reshape(E, H, Dh)
    # fold q into W_k / b_k so image scores need only one full-width matmul
    qwk = jnp.einsum("lhd,ehd->hle", q_h, w_k_h).reshape(H * L, E)
    qbk = jnp.einsum("lhd,hd->hl", q_h, b_k.reshape(H, Dh)).reshape(H * L, 1)
    # latent-token scores are fully batch-invariant -> precompute them
    s_lat = jnp.einsum("lhd,mhd->hlm", q_h,
                       k_lat.reshape(L, H, Dh)).reshape(H * L, L)

    # ---- pad image-token axis to a sublane multiple of 8 + additive pad mask ----
    S_pad = ((S + 7) // 8) * 8
    feats = features.astype(cdt)
    if S_pad != S:
        feats = jnp.pad(feats, ((0, 0), (0, S_pad - S), (0, 0)))
    mask_row = jnp.where(jnp.arange(S_pad)[None, :] < S,
                         jnp.float32(0.0), jnp.float32(-1e30))   # (1, S_pad)

    use_bf16_exp = (_bf16_eup_supported()
                    and jnp.dtype(cdt) == jnp.dtype(jnp.bfloat16))
    exp_dtype = cdt if use_bf16_exp else f32

    inputs = (feats,
              qwk.astype(cdt), qbk.astype(f32), mask_row.astype(f32),
              s_lat.astype(f32), v_lat.astype(cdt),
              w_d_c, b_d, w_v_c, b_v, w_o_c, b_o)

    # ---- generation-aware VMEM budget (buffer-count-aware estimate) ----
    def vmem_limit(invariant_buffers):
        invariant = sum(int(x.size) * x.dtype.itemsize for x in inputs[1:])
        stream = 2 * S_pad * V * feats.dtype.itemsize            # features (2-deep)
        out_stream = 2 * L * E * features.dtype.itemsize         # output (2-deep)
        transient = (2 * S_pad * E * (4 + feats.dtype.itemsize)  # hs / v_img (+bf16)
                     + 2 * (H * L) * (S_pad + L) * 4             # scores + probs
                     + L * E * 8)                                # ctx scratch + tile
        est = invariant * invariant_buffers + stream + out_stream + transient
        cap = _vmem_capacity_bytes()
        return int(min(max(est + (4 << 20), 32 << 20), cap - (2 << 20)))
    # TODO(synk): at full Kosmos-2 size on v7x (64 MiB/TC VMEM), stream qwk /
    # w_v / w_o from HBM (pl.ANY + pltpu.emit_pipeline over N-tiles) instead of
    # keeping them resident, and evaluate the transposed (S_pad x H*L) score
    # matmul for full 256-lane MXU column utilisation on v6e/v7x.

    def run(invariant_mode, exp_dt):
        def inv_spec(shape):
            nd = len(shape)
            if invariant_mode is None:
                return pl.BlockSpec(shape, lambda b, _nd=nd: (0,) * _nd)
            return pl.BlockSpec(shape, lambda b, _nd=nd: (0,) * _nd,
                                pipeline_mode=invariant_mode)

        grid_spec = pltpu.PrefetchScalarGridSpec(
            num_scalar_prefetch=0,
            grid=(B,),
            in_specs=[
                pl.BlockSpec((pl.Squeezed(), S_pad, V), lambda b: (b, 0, 0)),
                inv_spec((H * L, E)),                     # q (.) W_k folded
                inv_spec((H * L, 1)),                     # q (.) b_k folded
                inv_spec((1, S_pad)),                     # additive padding mask
                inv_spec((H * L, L)),                     # latent scores
                inv_spec((L, E)),                         # latent values
                inv_spec((V, E)), inv_spec((1, E)),       # dense
                inv_spec((E, E)), inv_spec((1, E)),       # v_proj
                inv_spec((E, E)), inv_spec((1, E)),       # out_proj
            ],
            out_specs=pl.BlockSpec((pl.Squeezed(), L, E), lambda b: (b, 0, 0)),
            scratch_shapes=[pltpu.VMEM((L, E), jnp.float32)],   # per-head ctx tile
        )
        n_buf = 1 if invariant_mode is not None else 2
        return pl.pallas_call(
            partial(connector_kernel, num_heads=H, head_dim=Dh,
                    latent_len=L, exp_dtype=exp_dt),
            out_shape=jax.ShapeDtypeStruct((B, L, E), features.dtype),
            grid_spec=grid_spec,
            compiler_params=pltpu.CompilerParams(
                dimension_semantics=("parallel",),
                vmem_limit_bytes=vmem_limit(n_buf)),
        )(*inputs)

    # Preferred config first (single-buffered invariants, chip-matched exp dtype);
    # degrade gracefully if this JAX / chip combination rejects it.
    attempts = [("single", exp_dtype), ("double", exp_dtype)]
    if jnp.dtype(exp_dtype) != jnp.dtype(f32):
        attempts += [("single", f32), ("double", f32)]
    out, last_err = None, None
    for mode_name, edt in attempts:
        try:
            mode = pl.Buffered(1) if mode_name == "single" else None
            out = run(mode, edt)
            last_err = None
            break
        except Exception as e:                 # lowering / compile rejection
            last_err = e
    if last_err is not None:
        raise last_err

    # output_attentions is None/falsy -> attn_weights is None (as in PyTorch)
    return out, None


def connector_ref(features, params, num_heads, compute_dtype=jnp.bfloat16):
    """Pure-JAX reference mirroring the PyTorch forward (with bf16-cast params)."""
    f32 = jnp.float32
    cd = lambda x: x.astype(compute_dtype).astype(f32)
    B, S, V = features.shape
    L, E = params["latent_query"].shape
    Dh = E // num_heads
    scaling = Dh ** (-0.5)

    feats = cd(features)
    lq = cd(params["latent_query"])
    hs = feats @ cd(params["w_dense"]) + params["b_dense"].astype(f32)
    lq_b = jnp.broadcast_to(lq[None], (B, L, E))
    kv = jnp.concatenate([hs, lq_b], axis=1)

    q = (lq_b @ cd(params["w_q"]) + params["b_q"].astype(f32)) * scaling
    k = kv @ cd(params["w_k"]) + params["b_k"].astype(f32)
    v = kv @ cd(params["w_v"]) + params["b_v"].astype(f32)

    def split(x):
        b, t, _ = x.shape
        return x.reshape(b, t, num_heads, Dh).transpose(0, 2, 1, 3)

    qh, kh, vh = split(q), split(k), split(v)
    w = jax.nn.softmax(jnp.einsum("bhld,bhtd->bhlt", qh, kh), axis=-1)
    ctx = jnp.einsum("bhlt,bhtd->bhld", w, vh).transpose(0, 2, 1, 3).reshape(B, L, E)
    return ctx @ cd(params["w_o"]) + params["b_o"].astype(f32)


if __name__ == "__main__":
    # Small synthetic config:
    #   vision_config.hidden_size = 48, text_config.embed_dim = 32,
    #   text_config.attention_heads = 4, latent_query_num = 8,
    #   batch = 2, image sequence length = 13 (exercises the S-padding/mask path).
    B, S, V, E, H, L = 2, 13, 48, 32, 4, 8

    key = jax.random.PRNGKey(0)
    keys = jax.random.split(key, 12)
    s = 0.05  # small weight scale for deterministic synthetic params

    params = {
        "w_dense": jax.random.normal(keys[0], (V, E), jnp.float32) * s,
        "b_dense": jax.random.normal(keys[1], (1, E), jnp.float32) * s,
        "latent_query": jax.random.normal(keys[2], (L, E), jnp.float32),
        "w_q": jax.random.normal(keys[3], (E, E), jnp.float32) * s,
        "b_q": jax.random.normal(keys[4], (1, E), jnp.float32) * s,
        "w_k": jax.random.normal(keys[5], (E, E), jnp.float32) * s,
        "b_k": jax.random.normal(keys[6], (1, E), jnp.float32) * s,
        "w_v": jax.random.normal(keys[7], (E, E), jnp.float32) * s,
        "b_v": jax.random.normal(keys[8], (1, E), jnp.float32) * s,
        "w_o": jax.random.normal(keys[9], (E, E), jnp.float32) * s,
        "b_o": jax.random.normal(keys[10], (1, E), jnp.float32) * s,
    }
    features = jax.random.normal(keys[11], (B, S, V), jnp.float32)

    out, attn_weights = connector_forward(features, params, num_heads=H)
    out = jax.block_until_ready(out)

    ref = connector_ref(features, params, num_heads=H)
    assert out.shape == (B, L, E)
    assert attn_weights is None
    max_err = float(jnp.max(jnp.abs(out - ref)))
    assert jnp.allclose(out, ref, atol=1e-2, rtol=1e-2), \
        f"mismatch vs JAX reference (max abs err {max_err})"

    print("KERNEL_OK")
</pallas_src>

<mosaic_0001>
module attributes {stable_mosaic.version = 11 : i64} {
  func.func @connector_kernel(%arg0: i32, %arg1: memref<1x16x48xbf16, #tpu.memory_space<vmem>>, %arg2: memref<32x32xbf16, #tpu.memory_space<vmem>>, %arg3: memref<32x1xf32, #tpu.memory_space<vmem>>, %arg4: memref<1x16xf32, #tpu.memory_space<vmem>>, %arg5: memref<32x8xf32, #tpu.memory_space<vmem>>, %arg6: memref<8x32xbf16, #tpu.memory_space<vmem>>, %arg7: memref<48x32xbf16, #tpu.memory_space<vmem>>, %arg8: memref<1x32xf32, #tpu.memory_space<vmem>>, %arg9: memref<32x32xbf16, #tpu.memory_space<vmem>>, %arg10: memref<1x32xf32, #tpu.memory_space<vmem>>, %arg11: memref<32x32xbf16, #tpu.memory_space<vmem>>, %arg12: memref<1x32xf32, #tpu.memory_space<vmem>>, %arg13: memref<1x8x32xf32, #tpu.memory_space<vmem>>, %arg14: memref<8x32xf32, #tpu.memory_space<vmem>>) attributes {dimension_semantics = [#tpu.dimension_semantics<parallel>], iteration_bounds = array<i64: 2>, scalar_prefetch = 0 : i64, scratch_operands = 1 : i64, tpu.core_type = #tpu.core_type<tc>, window_params = [{transform_indices = @transform_0, window_bounds = array<i64: 1, 16, 48>}, {pipeline_mode = #tpu.pipeline_mode<synchronous>, transform_indices = @transform_1, window_bounds = array<i64: 32, 32>}, {pipeline_mode = #tpu.pipeline_mode<synchronous>, transform_indices = @transform_2, window_bounds = array<i64: 32, 1>}, {pipeline_mode = #tpu.pipeline_mode<synchronous>, transform_indices = @transform_3, window_bounds = array<i64: 1, 16>}, {pipeline_mode = #tpu.pipeline_mode<synchronous>, transform_indices = @transform_4, window_bounds = array<i64: 32, 8>}, {pipeline_mode = #tpu.pipeline_mode<synchronous>, transform_indices = @transform_5, window_bounds = array<i64: 8, 32>}, {pipeline_mode = #tpu.pipeline_mode<synchronous>, transform_indices = @transform_6, window_bounds = array<i64: 48, 32>}, {pipeline_mode = #tpu.pipeline_mode<synchronous>, transform_indices = @transform_7, window_bounds = array<i64: 1, 32>}, {pipeline_mode = #tpu.pipeline_mode<synchronous>, transform_indices = @transform_8, window_bounds = array<i64: 32, 32>}, {pipeline_mode = #tpu.pipeline_mode<synchronous>, transform_indices = @transform_9, window_bounds = array<i64: 1, 32>}, {pipeline_mode = #tpu.pipeline_mode<synchronous>, transform_indices = @transform_10, window_bounds = array<i64: 32, 32>}, {pipeline_mode = #tpu.pipeline_mode<synchronous>, transform_indices = @transform_11, window_bounds = array<i64: 1, 32>}, {transform_indices = @transform_12, window_bounds = array<i64: 1, 8, 32>}]} {
    %c0 = arith.constant 0 : index
    %c0_0 = arith.constant 0 : index
    %c0_1 = arith.constant 0 : index
    %0 = vector.load %arg1[%c0, %c0_0, %c0_1] : memref<1x16x48xbf16, #tpu.memory_space<vmem>>, vector<1x16x48xbf16>
    %1 = vector.shape_cast %0 : vector<1x16x48xbf16> to vector<16x48xbf16>
    %c0_2 = arith.constant 0 : index
    %c0_3 = arith.constant 0 : index
    %2 = vector.load %arg7[%c0_2, %c0_3] : memref<48x32xbf16, #tpu.memory_space<vmem>>, vector<48x32xbf16>
    %cst = arith.constant dense<0.000000e+00> : vector<16x32xf32>
    %3 = tpu.matmul %1, %2, %cst {dimension_numbers = #tpu.dot_dimension_numbers<[1], [0], [0], [1], [0, 0, 1, 1], [], []>} : vector<16x48xbf16>, vector<48x32xbf16>, vector<16x32xf32> -> vector<16x32xf32>
    %c0_4 = arith.constant 0 : index
    %c0_5 = arith.constant 0 : index
    %4 = vector.load %arg8[%c0_4, %c0_5] : memref<1x32xf32, #tpu.memory_space<vmem>>, vector<1x32xf32>
    %5 = vector.broadcast %4 : vector<1x32xf32> to vector<16x32xf32>
    %6 = arith.addf %3, %5 : vector<16x32xf32>
    %7 = arith.truncf %6 : vector<16x32xf32> to vector<16x32xbf16>
    %c0_6 = arith.constant 0 : index
    %c0_7 = arith.constant 0 : index
    %8 = vector.load %arg2[%c0_6, %c0_7] : memref<32x32xbf16, #tpu.memory_space<vmem>>, vector<32x32xbf16>
    %cst_8 = arith.constant dense<0.000000e+00> : vector<32x16xf32>
    %9 = tpu.matmul %8, %7, %cst_8 {dimension_numbers = #tpu.dot_dimension_numbers<[1], [1], [0], [0], [0, 0, 1, 0], [], []>} : vector<32x32xbf16>, vector<16x32xbf16>, vector<32x16xf32> -> vector<32x16xf32>
    %c0_9 = arith.constant 0 : index
    %c0_10 = arith.constant 0 : index
    %10 = vector.load %arg3[%c0_9, %c0_10] : memref<32x1xf32, #tpu.memory_space<vmem>>, vector<32x1xf32>
    %11 = vector.broadcast %10 : vector<32x1xf32> to vector<32x16xf32>
    %12 = arith.addf %9, %11 : vector<32x16xf32>
    %c0_11 = arith.constant 0 : index
    %c0_12 = arith.constant 0 : index
    %13 = vector.load %arg4[%c0_11, %c0_12] : memref<1x16xf32, #tpu.memory_space<vmem>>, vector<1x16xf32>
    %14 = vector.broadcast %13 : vector<1x16xf32> to vector<32x16xf32>
    %15 = arith.addf %12, %14 : vector<32x16xf32>
    %c0_13 = arith.constant 0 : index
    %c0_14 = arith.constant 0 : index
    %16 = vector.load %arg5[%c0_13, %c0_14] : memref<32x8xf32, #tpu.memory_space<vmem>>, vector<32x8xf32>
    %cst_15 = arith.constant dense<0xFF800000> : vector<32xf32>
    %17 = vector.multi_reduction <maximumf>, %15, %cst_15 [1] : vector<32x16xf32> to vector<32xf32>
    %18 = vector.shape_cast %17 : vector<32xf32> to vector<32x1xf32>
    %cst_16 = arith.constant dense<0xFF800000> : vector<32xf32>
    %19 = vector.multi_reduction <maximumf>, %16, %cst_16 [1] : vector<32x8xf32> to vector<32xf32>
    %20 = vector.shape_cast %19 : vector<32xf32> to vector<32x1xf32>
    %21 = arith.maximumf %18, %20 : vector<32x1xf32>
    %22 = vector.broadcast %21 : vector<32x1xf32> to vector<32x16xf32>
    %23 = arith.subf %15, %22 : vector<32x16xf32>
    %24 = math.exp %23 : vector<32x16xf32>
    %25 = vector.broadcast %21 : vector<32x1xf32> to vector<32x8xf32>
    %26 = arith.subf %16, %25 : vector<32x8xf32>
    %27 = math.exp %26 : vector<32x8xf32>
    %cst_17 = arith.constant dense<0.000000e+00> : vector<32xf32>
    %28 = vector.multi_reduction <add>, %24, %cst_17 [1] : vector<32x16xf32> to vector<32xf32>
    %29 = vector.shape_cast %28 : vector<32xf32> to vector<32x1xf32>
    %cst_18 = arith.constant dense<0.000000e+00> : vector<32xf32>
    %30 = vector.multi_reduction <add>, %27, %cst_18 [1] : vector<32x8xf32> to vector<32xf32>
    %31 = vector.shape_cast %30 : vector<32xf32> to vector<32x1xf32>
    %32 = arith.addf %29, %31 : vector<32x1xf32>
    %33 = tpu.reciprocal %32 {approx = true} : vector<32x1xf32> -> vector<32x1xf32>
    %34 = arith.truncf %24 : vector<32x16xf32> to vector<32x16xbf16>
    %35 = arith.truncf %27 : vector<32x8xf32> to vector<32x8xbf16>
    %c0_19 = arith.constant 0 : index
    %c0_20 = arith.constant 0 : index
    %36 = vector.load %arg9[%c0_19, %c0_20] : memref<32x32xbf16, #tpu.memory_space<vmem>>, vector<32x32xbf16>
    %cst_21 = arith.constant dense<0.000000e+00> : vector<16x32xf32>
    %37 = tpu.matmul %7, %36, %cst_21 {dimension_numbers = #tpu.dot_dimension_numbers<[1], [0], [0], [1], [0, 0, 1, 1], [], []>} : vector<16x32xbf16>, vector<32x32xbf16>, vector<16x32xf32> -> vector<16x32xf32>
    %c0_22 = arith.constant 0 : index
    %c0_23 = arith.constant 0 : index
    %38 = vector.load %arg10[%c0_22, %c0_23] : memref<1x32xf32, #tpu.memory_space<vmem>>, vector<1x32xf32>
    %39 = vector.broadcast %38 : vector<1x32xf32> to vector<16x32xf32>
    %40 = arith.addf %37, %39 : vector<16x32xf32>
    %41 = arith.truncf %40 : vector<16x32xf32> to vector<16x32xbf16>
    %c0_24 = arith.constant 0 : index
    %c0_25 = arith.constant 0 : index
    %42 = vector.load %arg6[%c0_24, %c0_25] : memref<8x32xbf16, #tpu.memory_space<vmem>>, vector<8x32xbf16>
    %43 = vector.extract_strided_slice %34 {offsets = [0, 0], sizes = [8, 16], strides = [1, 1]} : vector<32x16xbf16> to vector<8x16xbf16>
    %44 = vector.extract_strided_slice %41 {offsets = [0, 0], sizes = [16, 8], strides = [1, 1]} : vector<16x32xbf16> to vector<16x8xbf16>
    %cst_26 = arith.constant dense<0.000000e+00> : vector<8x8xf32>
    %45 = tpu.matmul %43, %44, %cst_26 {dimension_numbers = #tpu.dot_dimension_numbers<[1], [0], [0], [1], [0, 0, 1, 1], [], []>} : vector<8x16xbf16>, vector<16x8xbf16>, vector<8x8xf32> -> vector<8x8xf32>
    %46 = vector.extract_strided_slice %35 {offsets = [0, 0], sizes = [8, 8], strides = [1, 1]} : vector<32x8xbf16> to vector<8x8xbf16>
    %47 = vector.extract_strided_slice %42 {offsets = [0, 0], sizes = [8, 8], strides = [1, 1]} : vector<8x32xbf16> to vector<8x8xbf16>
    %cst_27 = arith.constant dense<0.000000e+00> : vector<8x8xf32>
    %48 = tpu.matmul %46, %47, %cst_27 {dimension_numbers = #tpu.dot_dimension_numbers<[1], [0], [0], [1], [0, 0, 1, 1], [], []>} : vector<8x8xbf16>, vector<8x8xbf16>, vector<8x8xf32> -> vector<8x8xf32>
    %49 = arith.addf %45, %48 : vector<8x8xf32>
    %50 = vector.extract_strided_slice %33 {offsets = [0, 0], sizes = [8, 1], strides = [1, 1]} : vector<32x1xf32> to vector<8x1xf32>
    %51 = vector.broadcast %50 : vector<8x1xf32> to vector<8x8xf32>
    %52 = arith.mulf %49, %51 : vector<8x8xf32>
    %53 = vector.extract_strided_slice %34 {offsets = [8, 0], sizes = [8, 16], strides = [1, 1]} : vector<32x16xbf16> to vector<8x16xbf16>
    %54 = vector.extract_strided_slice %41 {offsets = [0, 8], sizes = [16, 8], strides = [1, 1]} : vector<16x32xbf16> to vector<16x8xbf16>
    %cst_28 = arith.constant dense<0.000000e+00> : vector<8x8xf32>
    %55 = tpu.matmul %53, %54, %cst_28 {dimension_numbers = #tpu.dot_dimension_numbers<[1], [0], [0], [1], [0, 0, 1, 1], [], []>} : vector<8x16xbf16>, vector<16x8xbf16>, vector<8x8xf32> -> vector<8x8xf32>
    %56 = vector.extract_strided_slice %35 {offsets = [8, 0], sizes = [8, 8], strides = [1, 1]} : vector<32x8xbf16> to vector<8x8xbf16>
    %57 = vector.extract_strided_slice %42 {offsets = [0, 8], sizes = [8, 8], strides = [1, 1]} : vector<8x32xbf16> to vector<8x8xbf16>
    %cst_29 = arith.constant dense<0.000000e+00> : vector<8x8xf32>
    %58 = tpu.matmul %56, %57, %cst_29 {dimension_numbers = #tpu.dot_dimension_numbers<[1], [0], [0], [1], [0, 0, 1, 1], [], []>} : vector<8x8xbf16>, vector<8x8xbf16>, vector<8x8xf32> -> vector<8x8xf32>
    %59 = arith.addf %55, %58 : vector<8x8xf32>
    %60 = vector.extract_strided_slice %33 {offsets = [8, 0], sizes = [8, 1], strides = [1, 1]} : vector<32x1xf32> to vector<8x1xf32>
    %61 = vector.broadcast %60 : vector<8x1xf32> to vector<8x8xf32>
    %62 = arith.mulf %59, %61 : vector<8x8xf32>
    %63 = tpu.concatenate %52, %62 in 1 : vector<8x8xf32>, vector<8x8xf32> -> vector<8x16xf32>
    %c0_30 = arith.constant 0 : index
    %c0_31 = arith.constant 0 : index
    %64 = vector.load %arg14[%c0_30, %c0_31] : memref<8x32xf32, #tpu.memory_space<vmem>>, vector<8x16xf32>
    tpu.vector_store %arg14[%c0_30, %c0_31], %63 {strides = array<i32>} : memref<8x32xf32, #tpu.memory_space<vmem>>, vector<8x16xf32>,
    %65 = vector.extract_strided_slice %34 {offsets = [16, 0], sizes = [8, 16], strides = [1, 1]} : vector<32x16xbf16> to vector<8x16xbf16>
    %66 = vector.extract_strided_slice %41 {offsets = [0, 16], sizes = [16, 8], strides = [1, 1]} : vector<16x32xbf16> to vector<16x8xbf16>
    %cst_32 = arith.constant dense<0.000000e+00> : vector<8x8xf32>
    %67 = tpu.matmul %65, %66, %cst_32 {dimension_numbers = #tpu.dot_dimension_numbers<[1], [0], [0], [1], [0, 0, 1, 1], [], []>} : vector<8x16xbf16>, vector<16x8xbf16>, vector<8x8xf32> -> vector<8x8xf32>
    %68 = vector.extract_strided_slice %35 {offsets = [16, 0], sizes = [8, 8], strides = [1, 1]} : vector<32x8xbf16> to vector<8x8xbf16>
    %69 = vector.extract_strided_slice %42 {offsets = [0, 16], sizes = [8, 8], strides = [1, 1]} : vector<8x32xbf16> to vector<8x8xbf16>
    %cst_33 = arith.constant dense<0.000000e+00> : vector<8x8xf32>
    %70 = tpu.matmul %68, %69, %cst_33 {dimension_numbers = #tpu.dot_dimension_numbers<[1], [0], [0], [1], [0, 0, 1, 1], [], []>} : vector<8x8xbf16>, vector<8x8xbf16>, vector<8x8xf32> -> vector<8x8xf32>
    %71 = arith.addf %67, %70 : vector<8x8xf32>
    %72 = vector.extract_strided_slice %33 {offsets = [16, 0], sizes = [8, 1], strides = [1, 1]} : vector<32x1xf32> to vector<8x1xf32>
    %73 = vector.broadcast %72 : vector<8x1xf32> to vector<8x8xf32>
    %74 = arith.mulf %71, %73 : vector<8x8xf32>
    %75 = vector.extract_strided_slice %34 {offsets = [24, 0], sizes = [8, 16], strides = [1, 1]} : vector<32x16xbf16> to vector<8x16xbf16>
    %76 = vector.extract_strided_slice %41 {offsets = [0, 24], sizes = [16, 8], strides = [1, 1]} : vector<16x32xbf16> to vector<16x8xbf16>
    %cst_34 = arith.constant dense<0.000000e+00> : vector<8x8xf32>
    %77 = tpu.matmul %75, %76, %cst_34 {dimension_numbers = #tpu.dot_dimension_numbers<[1], [0], [0], [1], [0, 0, 1, 1], [], []>} : vector<8x16xbf16>, vector<16x8xbf16>, vector<8x8xf32> -> vector<8x8xf32>
    %78 = vector.extract_strided_slice %35 {offsets = [24, 0], sizes = [8, 8], strides = [1, 1]} : vector<32x8xbf16> to vector<8x8xbf16>
    %79 = vector.extract_strided_slice %42 {offsets = [0, 24], sizes = [8, 8], strides = [1, 1]} : vector<8x32xbf16> to vector<8x8xbf16>
    %cst_35 = arith.constant dense<0.000000e+00> : vector<8x8xf32>
    %80 = tpu.matmul %78, %79, %cst_35 {dimension_numbers = #tpu.dot_dimension_numbers<[1], [0], [0], [1], [0, 0, 1, 1], [], []>} : vector<8x8xbf16>, vector<8x8xbf16>, vector<8x8xf32> -> vector<8x8xf32>
    %81 = arith.addf %77, %80 : vector<8x8xf32>
    %82 = vector.extract_strided_slice %33 {offsets = [24, 0], sizes = [8, 1], strides = [1, 1]} : vector<32x1xf32> to vector<8x1xf32>
    %83 = vector.broadcast %82 : vector<8x1xf32> to vector<8x8xf32>
    %84 = arith.mulf %81, %83 : vector<8x8xf32>
    %85 = tpu.concatenate %74, %84 in 1 : vector<8x8xf32>, vector<8x8xf32> -> vector<8x16xf32>
    %c0_36 = arith.constant 0 : index
    %c16 = arith.constant 16 : index
    %86 = vector.load %arg14[%c0_36, %c16] : memref<8x32xf32, #tpu.memory_space<vmem>>, vector<8x16xf32>
    tpu.vector_store %arg14[%c0_36, %c16], %85 {strides = array<i32>} : memref<8x32xf32, #tpu.memory_space<vmem>>, vector<8x16xf32>,
    %c0_37 = arith.constant 0 : index
    %c0_38 = arith.constant 0 : index
    %87 = vector.load %arg14[%c0_37, %c0_38] : memref<8x32xf32, #tpu.memory_space<vmem>>, vector<8x32xf32>
    %88 = arith.truncf %87 : vector<8x32xf32> to vector<8x32xbf16>
    %c0_39 = arith.constant 0 : index
    %c0_40 = arith.constant 0 : index
    %89 = vector.load %arg11[%c0_39, %c0_40] : memref<32x32xbf16, #tpu.memory_space<vmem>>, vector<32x32xbf16>
    %cst_41 = arith.constant dense<0.000000e+00> : vector<8x32xf32>
    %90 = tpu.matmul %88, %89, %cst_41 {dimension_numbers = #tpu.dot_dimension_numbers<[1], [0], [0], [1], [0, 0, 1, 1], [], []>} : vector<8x32xbf16>, vector<32x32xbf16>, vector<8x32xf32> -> vector<8x32xf32>
    %c0_42 = arith.constant 0 : index
    %c0_43 = arith.constant 0 : index
    %91 = vector.load %arg12[%c0_42, %c0_43] : memref<1x32xf32, #tpu.memory_space<vmem>>, vector<1x32xf32>
    %92 = vector.broadcast %91 : vector<1x32xf32> to vector<8x32xf32>
    %93 = arith.addf %90, %92 : vector<8x32xf32>
    %c0_44 = arith.constant 0 : index
    %c0_45 = arith.constant 0 : index
    %c0_46 = arith.constant 0 : index
    %94 = vector.load %arg13[%c0_44, %c0_45, %c0_46] : memref<1x8x32xf32, #tpu.memory_space<vmem>>, vector<1x8x32xf32>
    %95 = vector.shape_cast %94 : vector<1x8x32xf32> to vector<8x32xf32>
    %96 = vector.shape_cast %93 : vector<8x32xf32> to vector<1x8x32xf32>
    tpu.vector_store %arg13[%c0_44, %c0_45, %c0_46], %96 {strides = array<i32>} : memref<1x8x32xf32, #tpu.memory_space<vmem>>, vector<1x8x32xf32>,
    return
  }
  func.func @transform_0(%arg0: i32) -> (i32, i32, i32) {
    %c0_i32 = arith.constant 0 : i32
    %c0_i32_0 = arith.constant 0 : i32
    %c0_i32_1 = arith.constant 0 : i32
    return %arg0, %c0_i32, %c0_i32_0 : i32, i32, i32
  }
  func.func @transform_1(%arg0: i32) -> (i32, i32) {
    %c0_i32 = arith.constant 0 : i32
    %c0_i32_0 = arith.constant 0 : i32
    %c0_i32_1 = arith.constant 0 : i32
    return %c0_i32, %c0_i32_0 : i32, i32
  }
  func.func @transform_2(%arg0: i32) -> (i32, i32) {
    %c0_i32 = arith.constant 0 : i32
    %c0_i32_0 = arith.constant 0 : i32
    %c0_i32_1 = arith.constant 0 : i32
    return %c0_i32, %c0_i32_0 : i32, i32
  }
  func.func @transform_3(%arg0: i32) -> (i32, i32) {
    %c0_i32 = arith.constant 0 : i32
    %c0_i32_0 = arith.constant 0 : i32
    %c0_i32_1 = arith.constant 0 : i32
    return %c0_i32, %c0_i32_0 : i32, i32
  }
  func.func @transform_4(%arg0: i32) -> (i32, i32) {
    %c0_i32 = arith.constant 0 : i32
    %c0_i32_0 = arith.constant 0 : i32
    %c0_i32_1 = arith.constant 0 : i32
    return %c0_i32, %c0_i32_0 : i32, i32
  }
  func.func @transform_5(%arg0: i32) -> (i32, i32) {
    %c0_i32 = arith.constant 0 : i32
    %c0_i32_0 = arith.constant 0 : i32
    %c0_i32_1 = arith.constant 0 : i32
    return %c0_i32, %c0_i32_0 : i32, i32
  }
  func.func @transform_6(%arg0: i32) -> (i32, i32) {
    %c0_i32 = arith.constant 0 : i32
    %c0_i32_0 = arith.constant 0 : i32
    %c0_i32_1 = arith.constant 0 : i32
    return %c0_i32, %c0_i32_0 : i32, i32
  }
  func.func @transform_7(%arg0: i32) -> (i32, i32) {
    %c0_i32 = arith.constant 0 : i32
    %c0_i32_0 = arith.constant 0 : i32
    %c0_i32_1 = arith.constant 0 : i32
    return %c0_i32, %c0_i32_0 : i32, i32
  }
  func.func @transform_8(%arg0: i32) -> (i32, i32) {
    %c0_i32 = arith.constant 0 : i32
    %c0_i32_0 = arith.constant 0 : i32
    %c0_i32_1 = arith.constant 0 : i32
    return %c0_i32, %c0_i32_0 : i32, i32
  }
  func.func @transform_9(%arg0: i32) -> (i32, i32) {
    %c0_i32 = arith.constant 0 : i32
    %c0_i32_0 = arith.constant 0 : i32
    %c0_i32_1 = arith.constant 0 : i32
    return %c0_i32, %c0_i32_0 : i32, i32
  }
  func.func @transform_10(%arg0: i32) -> (i32, i32) {
    %c0_i32 = arith.constant 0 : i32
    %c0_i32_0 = arith.constant 0 : i32
    %c0_i32_1 = arith.constant 0 : i32
    return %c0_i32, %c0_i32_0 : i32, i32
  }
  func.func @transform_11(%arg0: i32) -> (i32, i32) {
    %c0_i32 = arith.constant 0 : i32
    %c0_i32_0 = arith.constant 0 : i32
    %c0_i32_1 = arith.constant 0 : i32
    return %c0_i32, %c0_i32_0 : i32, i32
  }
  func.func @transform_12(%arg0: i32) -> (i32, i32, i32) {
    %c0_i32 = arith.constant 0 : i32
    %c0_i32_0 = arith.constant 0 : i32
    %c0_i32_1 = arith.constant 0 : i32
    return %arg0, %c0_i32, %c0_i32_0 : i32, i32, i32
  }
}

module attributes {stable_mosaic.version = 11 : i64} {
  func.func @connector_kernel(%arg0: i32, %arg1: memref<1x16x48xbf16, #tpu.memory_space<vmem>>, %arg2: memref<32x32xbf16, #tpu.memory_space<vmem>>, %arg3: memref<32x1xf32, #tpu.memory_space<vmem>>, %arg4: memref<1x16xf32, #tpu.memory_space<vmem>>, %arg5: memref<32x8xf32, #tpu.memory_space<vmem>>, %arg6: memref<8x32xbf16, #tpu.memory_space<vmem>>, %arg7: memref<48x32xbf16, #tpu.memory_space<vmem>>, %arg8: memref<1x32xf32, #tpu.memory_space<vmem>>, %arg9: memref<32x32xbf16, #tpu.memory_space<vmem>>, %arg10: memref<1x32xf32, #tpu.memory_space<vmem>>, %arg11: memref<32x32xbf16, #tpu.memory_space<vmem>>, %arg12: memref<1x32xf32, #tpu.memory_space<vmem>>, %arg13: memref<1x8x32xf32, #tpu.memory_space<vmem>>, %arg14: memref<8x32xf32, #tpu.memory_space<vmem>>) attributes {dimension_semantics = [#tpu.dimension_semantics<parallel>], iteration_bounds = array<i64: 2>, scalar_prefetch = 0 : i64, scratch_operands = 1 : i64, tpu.core_type = #tpu.core_type<tc>, window_params = [{transform_indices = @transform_0, window_bounds = array<i64: 1, 16, 48>}, {pipeline_mode = #tpu.pipeline_mode<synchronous>, transform_indices = @transform_1, window_bounds = array<i64: 32, 32>}, {pipeline_mode = #tpu.pipeline_mode<synchronous>, transform_indices = @transform_2, window_bounds = array<i64: 32, 1>}, {pipeline_mode = #tpu.pipeline_mode<synchronous>, transform_indices = @transform_3, window_bounds = array<i64: 1, 16>}, {pipeline_mode = #tpu.pipeline_mode<synchronous>, transform_indices = @transform_4, window_bounds = array<i64: 32, 8>}, {pipeline_mode = #tpu.pipeline_mode<synchronous>, transform_indices = @transform_5, window_bounds = array<i64: 8, 32>}, {pipeline_mode = #tpu.pipeline_mode<synchronous>, transform_indices = @transform_6, window_bounds = array<i64: 48, 32>}, {pipeline_mode = #tpu.pipeline_mode<synchronous>, transform_indices = @transform_7, window_bounds = array<i64: 1, 32>}, {pipeline_mode = #tpu.pipeline_mode<synchronous>, transform_indices = @transform_8, window_bounds = array<i64: 32, 32>}, {pipeline_mode = #tpu.pipeline_mode<synchronous>, transform_indices = @transform_9, window_bounds = array<i64: 1, 32>}, {pipeline_mode = #tpu.pipeline_mode<synchronous>, transform_indices = @transform_10, window_bounds = array<i64: 32, 32>}, {pipeline_mode = #tpu.pipeline_mode<synchronous>, transform_indices = @transform_11, window_bounds = array<i64: 1, 32>}, {transform_indices = @transform_12, window_bounds = array<i64: 1, 8, 32>}]} {
    %c0 = arith.constant 0 : index
    %c0_0 = arith.constant 0 : index
    %c0_1 = arith.constant 0 : index
    %0 = vector.load %arg1[%c0, %c0_0, %c0_1] : memref<1x16x48xbf16, #tpu.memory_space<vmem>>, vector<1x16x48xbf16>
    %1 = vector.shape_cast %0 : vector<1x16x48xbf16> to vector<16x48xbf16>
    %c0_2 = arith.constant 0 : index
    %c0_3 = arith.constant 0 : index
    %2 = vector.load %arg7[%c0_2, %c0_3] : memref<48x32xbf16, #tpu.memory_space<vmem>>, vector<48x32xbf16>
    %cst = arith.constant dense<0.000000e+00> : vector<16x32xf32>
    %3 = tpu.matmul %1, %2, %cst {dimension_numbers = #tpu.dot_dimension_numbers<[1], [0], [0], [1], [0, 0, 1, 1], [], []>} : vector<16x48xbf16>, vector<48x32xbf16>, vector<16x32xf32> -> vector<16x32xf32>
    %c0_4 = arith.constant 0 : index
    %c0_5 = arith.constant 0 : index
    %4 = vector.load %arg8[%c0_4, %c0_5] : memref<1x32xf32, #tpu.memory_space<vmem>>, vector<1x32xf32>
    %5 = vector.broadcast %4 : vector<1x32xf32> to vector<16x32xf32>
    %6 = arith.addf %3, %5 : vector<16x32xf32>
    %7 = arith.truncf %6 : vector<16x32xf32> to vector<16x32xbf16>
    %c0_6 = arith.constant 0 : index
    %c0_7 = arith.constant 0 : index
    %8 = vector.load %arg2[%c0_6, %c0_7] : memref<32x32xbf16, #tpu.memory_space<vmem>>, vector<32x32xbf16>
    %cst_8 = arith.constant dense<0.000000e+00> : vector<32x16xf32>
    %9 = tpu.matmul %8, %7, %cst_8 {dimension_numbers = #tpu.dot_dimension_numbers<[1], [1], [0], [0], [0, 0, 1, 0], [], []>} : vector<32x32xbf16>, vector<16x32xbf16>, vector<32x16xf32> -> vector<32x16xf32>
    %c0_9 = arith.constant 0 : index
    %c0_10 = arith.constant 0 : index
    %10 = vector.load %arg3[%c0_9, %c0_10] : memref<32x1xf32, #tpu.memory_space<vmem>>, vector<32x1xf32>
    %11 = vector.broadcast %10 : vector<32x1xf32> to vector<32x16xf32>
    %12 = arith.addf %9, %11 : vector<32x16xf32>
    %c0_11 = arith.constant 0 : index
    %c0_12 = arith.constant 0 : index
    %13 = vector.load %arg4[%c0_11, %c0_12] : memref<1x16xf32, #tpu.memory_space<vmem>>, vector<1x16xf32>
    %14 = vector.broadcast %13 : vector<1x16xf32> to vector<32x16xf32>
    %15 = arith.addf %12, %14 : vector<32x16xf32>
    %c0_13 = arith.constant 0 : index
    %c0_14 = arith.constant 0 : index
    %16 = vector.load %arg5[%c0_13, %c0_14] : memref<32x8xf32, #tpu.memory_space<vmem>>, vector<32x8xf32>
    %cst_15 = arith.constant dense<0xFF800000> : vector<32xf32>
    %17 = vector.multi_reduction <maximumf>, %15, %cst_15 [1] : vector<32x16xf32> to vector<32xf32>
    %18 = vector.shape_cast %17 : vector<32xf32> to vector<32x1xf32>
    %cst_16 = arith.constant dense<0xFF800000> : vector<32xf32>
    %19 = vector.multi_reduction <maximumf>, %16, %cst_16 [1] : vector<32x8xf32> to vector<32xf32>
    %20 = vector.shape_cast %19 : vector<32xf32> to vector<32x1xf32>
    %21 = arith.maximumf %18, %20 : vector<32x1xf32>
    %22 = vector.broadcast %21 : vector<32x1xf32> to vector<32x16xf32>
    %23 = arith.subf %15, %22 : vector<32x16xf32>
    %24 = math.exp %23 : vector<32x16xf32>
    %25 = vector.broadcast %21 : vector<32x1xf32> to vector<32x8xf32>
    %26 = arith.subf %16, %25 : vector<32x8xf32>
    %27 = math.exp %26 : vector<32x8xf32>
    %cst_17 = arith.constant dense<0.000000e+00> : vector<32xf32>
    %28 = vector.multi_reduction <add>, %24, %cst_17 [1] : vector<32x16xf32> to vector<32xf32>
    %29 = vector.shape_cast %28 : vector<32xf32> to vector<32x1xf32>
    %cst_18 = arith.constant dense<0.000000e+00> : vector<32xf32>
    %30 = vector.multi_reduction <add>, %27, %cst_18 [1] : vector<32x8xf32> to vector<32xf32>
    %31 = vector.shape_cast %30 : vector<32xf32> to vector<32x1xf32>
    %32 = arith.addf %29, %31 : vector<32x1xf32>
    %33 = tpu.reciprocal %32 {approx = true} : vector<32x1xf32> -> vector<32x1xf32>
    %34 = arith.truncf %24 : vector<32x16xf32> to vector<32x16xbf16>
    %35 = arith.truncf %27 : vector<32x8xf32> to vector<32x8xbf16>
    %c0_19 = arith.constant 0 : index
    %c0_20 = arith.constant 0 : index
    %36 = vector.load %arg9[%c0_19, %c0_20] : memref<32x32xbf16, #tpu.memory_space<vmem>>, vector<32x32xbf16>
    %cst_21 = arith.constant dense<0.000000e+00> : vector<16x32xf32>
    %37 = tpu.matmul %7, %36, %cst_21 {dimension_numbers = #tpu.dot_dimension_numbers<[1], [0], [0], [1], [0, 0, 1, 1], [], []>} : vector<16x32xbf16>, vector<32x32xbf16>, vector<16x32xf32> -> vector<16x32xf32>
    %c0_22 = arith.constant 0 : index
    %c0_23 = arith.constant 0 : index
    %38 = vector.load %arg10[%c0_22, %c0_23] : memref<1x32xf32, #tpu.memory_space<vmem>>, vector<1x32xf32>
    %39 = vector.broadcast %38 : vector<1x32xf32> to vector<16x32xf32>
    %40 = arith.addf %37, %39 : vector<16x32xf32>
    %41 = arith.truncf %40 : vector<16x32xf32> to vector<16x32xbf16>
    %c0_24 = arith.constant 0 : index
    %c0_25 = arith.constant 0 : index
    %42 = vector.load %arg6[%c0_24, %c0_25] : memref<8x32xbf16, #tpu.memory_space<vmem>>, vector<8x32xbf16>
    %43 = vector.extract_strided_slice %34 {offsets = [0, 0], sizes = [8, 16], strides = [1, 1]} : vector<32x16xbf16> to vector<8x16xbf16>
    %44 = vector.extract_strided_slice %41 {offsets = [0, 0], sizes = [16, 8], strides = [1, 1]} : vector<16x32xbf16> to vector<16x8xbf16>
    %cst_26 = arith.constant dense<0.000000e+00> : vector<8x8xf32>
    %45 = tpu.matmul %43, %44, %cst_26 {dimension_numbers = #tpu.dot_dimension_numbers<[1], [0], [0], [1], [0, 0, 1, 1], [], []>} : vector<8x16xbf16>, vector<16x8xbf16>, vector<8x8xf32> -> vector<8x8xf32>
    %46 = vector.extract_strided_slice %35 {offsets = [0, 0], sizes = [8, 8], strides = [1, 1]} : vector<32x8xbf16> to vector<8x8xbf16>
    %47 = vector.extract_strided_slice %42 {offsets = [0, 0], sizes = [8, 8], strides = [1, 1]} : vector<8x32xbf16> to vector<8x8xbf16>
    %cst_27 = arith.constant dense<0.000000e+00> : vector<8x8xf32>
    %48 = tpu.matmul %46, %47, %cst_27 {dimension_numbers = #tpu.dot_dimension_numbers<[1], [0], [0], [1], [0, 0, 1, 1], [], []>} : vector<8x8xbf16>, vector<8x8xbf16>, vector<8x8xf32> -> vector<8x8xf32>
    %49 = arith.addf %45, %48 : vector<8x8xf32>
    %50 = vector.extract_strided_slice %33 {offsets = [0, 0], sizes = [8, 1], strides = [1, 1]} : vector<32x1xf32> to vector<8x1xf32>
    %51 = vector.broadcast %50 : vector<8x1xf32> to vector<8x8xf32>
    %52 = arith.mulf %49, %51 : vector<8x8xf32>
    %53 = vector.extract_strided_slice %34 {offsets = [8, 0], sizes = [8, 16], strides = [1, 1]} : vector<32x16xbf16> to vector<8x16xbf16>
    %54 = vector.extract_strided_slice %41 {offsets = [0, 8], sizes = [16, 8], strides = [1, 1]} : vector<16x32xbf16> to vector<16x8xbf16>
    %cst_28 = arith.constant dense<0.000000e+00> : vector<8x8xf32>
    %55 = tpu.matmul %53, %54, %cst_28 {dimension_numbers = #tpu.dot_dimension_numbers<[1], [0], [0], [1], [0, 0, 1, 1], [], []>} : vector<8x16xbf16>, vector<16x8xbf16>, vector<8x8xf32> -> vector<8x8xf32>
    %56 = vector.extract_strided_slice %35 {offsets = [8, 0], sizes = [8, 8], strides = [1, 1]} : vector<32x8xbf16> to vector<8x8xbf16>
    %57 = vector.extract_strided_slice %42 {offsets = [0, 8], sizes = [8, 8], strides = [1, 1]} : vector<8x32xbf16> to vector<8x8xbf16>
    %cst_29 = arith.constant dense<0.000000e+00> : vector<8x8xf32>
    %58 = tpu.matmul %56, %57, %cst_29 {dimension_numbers = #tpu.dot_dimension_numbers<[1], [0], [0], [1], [0, 0, 1, 1], [], []>} : vector<8x8xbf16>, vector<8x8xbf16>, vector<8x8xf32> -> vector<8x8xf32>
    %59 = arith.addf %55, %58 : vector<8x8xf32>
    %60 = vector.extract_strided_slice %33 {offsets = [8, 0], sizes = [8, 1], strides = [1, 1]} : vector<32x1xf32> to vector<8x1xf32>
    %61 = vector.broadcast %60 : vector<8x1xf32> to vector<8x8xf32>
    %62 = arith.mulf %59, %61 : vector<8x8xf32>
    %63 = tpu.concatenate %52, %62 in 1 : vector<8x8xf32>, vector<8x8xf32> -> vector<8x16xf32>
    %c0_30 = arith.constant 0 : index
    %c0_31 = arith.constant 0 : index
    %64 = vector.load %arg14[%c0_30, %c0_31] : memref<8x32xf32, #tpu.memory_space<vmem>>, vector<8x16xf32>
    tpu.vector_store %arg14[%c0_30, %c0_31], %63 {strides = array<i32>} : memref<8x32xf32, #tpu.memory_space<vmem>>, vector<8x16xf32>,
    %65 = vector.extract_strided_slice %34 {offsets = [16, 0], sizes = [8, 16], strides = [1, 1]} : vector<32x16xbf16> to vector<8x16xbf16>
    %66 = vector.extract_strided_slice %41 {offsets = [0, 16], sizes = [16, 8], strides = [1, 1]} : vector<16x32xbf16> to vector<16x8xbf16>
    %cst_32 = arith.constant dense<0.000000e+00> : vector<8x8xf32>
    %67 = tpu.matmul %65, %66, %cst_32 {dimension_numbers = #tpu.dot_dimension_numbers<[1], [0], [0], [1], [0, 0, 1, 1], [], []>} : vector<8x16xbf16>, vector<16x8xbf16>, vector<8x8xf32> -> vector<8x8xf32>
    %68 = vector.extract_strided_slice %35 {offsets = [16, 0], sizes = [8, 8], strides = [1, 1]} : vector<32x8xbf16> to vector<8x8xbf16>
    %69 = vector.extract_strided_slice %42 {offsets = [0, 16], sizes = [8, 8], strides = [1, 1]} : vector<8x32xbf16> to vector<8x8xbf16>
    %cst_33 = arith.constant dense<0.000000e+00> : vector<8x8xf32>
    %70 = tpu.matmul %68, %69, %cst_33 {dimension_numbers = #tpu.dot_dimension_numbers<[1], [0], [0], [1], [0, 0, 1, 1], [], []>} : vector<8x8xbf16>, vector<8x8xbf16>, vector<8x8xf32> -> vector<8x8xf32>
    %71 = arith.addf %67, %70 : vector<8x8xf32>
    %72 = vector.extract_strided_slice %33 {offsets = [16, 0], sizes = [8, 1], strides = [1, 1]} : vector<32x1xf32> to vector<8x1xf32>
    %73 = vector.broadcast %72 : vector<8x1xf32> to vector<8x8xf32>
    %74 = arith.mulf %71, %73 : vector<8x8xf32>
    %75 = vector.extract_strided_slice %34 {offsets = [24, 0], sizes = [8, 16], strides = [1, 1]} : vector<32x16xbf16> to vector<8x16xbf16>
    %76 = vector.extract_strided_slice %41 {offsets = [0, 24], sizes = [16, 8], strides = [1, 1]} : vector<16x32xbf16> to vector<16x8xbf16>
    %cst_34 = arith.constant dense<0.000000e+00> : vector<8x8xf32>
    %77 = tpu.matmul %75, %76, %cst_34 {dimension_numbers = #tpu.dot_dimension_numbers<[1], [0], [0], [1], [0, 0, 1, 1], [], []>} : vector<8x16xbf16>, vector<16x8xbf16>, vector<8x8xf32> -> vector<8x8xf32>
    %78 = vector.extract_strided_slice %35 {offsets = [24, 0], sizes = [8, 8], strides = [1, 1]} : vector<32x8xbf16> to vector<8x8xbf16>
    %79 = vector.extract_strided_slice %42 {offsets = [0, 24], sizes = [8, 8], strides = [1, 1]} : vector<8x32xbf16> to vector<8x8xbf16>
    %cst_35 = arith.constant dense<0.000000e+00> : vector<8x8xf32>
    %80 = tpu.matmul %78, %79, %cst_35 {dimension_numbers = #tpu.dot_dimension_numbers<[1], [0], [0], [1], [0, 0, 1, 1], [], []>} : vector<8x8xbf16>, vector<8x8xbf16>, vector<8x8xf32> -> vector<8x8xf32>
    %81 = arith.addf %77, %80 : vector<8x8xf32>
    %82 = vector.extract_strided_slice %33 {offsets = [24, 0], sizes = [8, 1], strides = [1, 1]} : vector<32x1xf32> to vector<8x1xf32>
    %83 = vector.broadcast %82 : vector<8x1xf32> to vector<8x8xf32>
    %84 = arith.mulf %81, %83 : vector<8x8xf32>
    %85 = tpu.concatenate %74, %84 in 1 : vector<8x8xf32>, vector<8x8xf32> -> vector<8x16xf32>
    %c0_36 = arith.constant 0 : index
    %c16 = arith.constant 16 : index
    %86 = vector.load %arg14[%c0_36, %c16] : memref<8x32xf32, #tpu.memory_space<vmem>>, vector<8x16xf32>
    tpu.vector_store %arg14[%c0_36, %c16], %85 {strides = array<i32>} : memref<8x32xf32, #tpu.memory_space<vmem>>, vector<8x16xf32>,
    %c0_37 = arith.constant 0 : index
    %c0_38 = arith.constant 0 : index
    %87 = vector.load %arg14[%c0_37, %c0_38] : memref<8x32xf32, #tpu.memory_space<vmem>>, vector<8x32xf32>
    %88 = arith.truncf %87 : vector<8x32xf32> to vector<8x32xbf16>
    %c0_39 = arith.constant 0 : index
    %c0_40 = arith.constant 0 : index
    %89 = vector.load %arg11[%c0_39, %c0_40] : memref<32x32xbf16, #tpu.memory_space<vmem>>, vector<32x32xbf16>
    %cst_41 = arith.constant dense<0.000000e+00> : vector<8x32xf32>
    %90 = tpu.matmul %88, %89, %cst_41 {dimension_numbers = #tpu.dot_dimension_numbers<[1], [0], [0], [1], [0, 0, 1, 1], [], []>} : vector<8x32xbf16>, vector<32x32xbf16>, vector<8x32xf32> -> vector<8x32xf32>
    %c0_42 = arith.constant 0 : index
    %c0_43 = arith.constant 0 : index
    %91 = vector.load %arg12[%c0_42, %c0_43] : memref<1x32xf32, #tpu.memory_space<vmem>>, vector<1x32xf32>
    %92 = vector.broadcast %91 : vector<1x32xf32> to vector<8x32xf32>
    %93 = arith.addf %90, %92 : vector<8x32xf32>
    %c0_44 = arith.constant 0 : index
    %c0_45 = arith.constant 0 : index
    %c0_46 = arith.constant 0 : index
    %94 = vector.load %arg13[%c0_44, %c0_45, %c0_46] : memref<1x8x32xf32, #tpu.memory_space<vmem>>, vector<1x8x32xf32>
    %95 = vector.shape_cast %94 : vector<1x8x32xf32> to vector<8x32xf32>
    %96 = vector.shape_cast %93 : vector<8x32xf32> to vector<1x8x32xf32>
    tpu.vector_store %arg13[%c0_44, %c0_45, %c0_46], %96 {strides = array<i32>} : memref<1x8x32xf32, #tpu.memory_space<vmem>>, vector<1x8x32xf32>,
    return
  }
  func.func @transform_0(%arg0: i32) -> (i32, i32, i32) {
    %c0_i32 = arith.constant 0 : i32
    %c0_i32_0 = arith.constant 0 : i32
    %c0_i32_1 = arith.constant 0 : i32
    return %arg0, %c0_i32, %c0_i32_0 : i32, i32, i32
  }
  func.func @transform_1(%arg0: i32) -> (i32, i32) {
    %c0_i32 = arith.constant 0 : i32
    %c0_i32_0 = arith.constant 0 : i32
    %c0_i32_1 = arith.constant 0 : i32
    return %c0_i32, %c0_i32_0 : i32, i32
  }
  func.func @transform_2(%arg0: i32) -> (i32, i32) {
    %c0_i32 = arith.constant 0 : i32
    %c0_i32_0 = arith.constant 0 : i32
    %c0_i32_1 = arith.constant 0 : i32
    return %c0_i32, %c0_i32_0 : i32, i32
  }
  func.func @transform_3(%arg0: i32) -> (i32, i32) {
    %c0_i32 = arith.constant 0 : i32
    %c0_i32_0 = arith.constant 0 : i32
    %c0_i32_1 = arith.constant 0 : i32
    return %c0_i32, %c0_i32_0 : i32, i32
  }
  func.func @transform_4(%arg0: i32) -> (i32, i32) {
    %c0_i32 = arith.constant 0 : i32
    %c0_i32_0 = arith.constant 0 : i32
    %c0_i32_1 = arith.constant 0 : i32
    return %c0_i32, %c0_i32_0 : i32, i32
  }
  func.func @transform_5(%arg0: i32) -> (i32, i32) {
    %c0_i32 = arith.constant 0 : i32
    %c0_i32_0 = arith.constant 0 : i32
    %c0_i32_1 = arith.constant 0 : i32
    return %c0_i32, %c0_i32_0 : i32, i32
  }
  func.func @transform_6(%arg0: i32) -> (i32, i32) {
    %c0_i32 = arith.constant 0 : i32
    %c0_i32_0 = arith.constant 0 : i32
    %c0_i32_1 = arith.constant 0 : i32
    return %c0_i32, %c0_i32_0 : i32, i32
  }
  func.func @transform_7(%arg0: i32) -> (i32, i32) {
    %c0_i32 = arith.constant 0 : i32
    %c0_i32_0 = arith.constant 0 : i32
    %c0_i32_1 = arith.constant 0 : i32
    return %c0_i32, %c0_i32_0 : i32, i32
  }
  func.func @transform_8(%arg0: i32) -> (i32, i32) {
    %c0_i32 = arith.constant 0 : i32
    %c0_i32_0 = arith.constant 0 : i32
    %c0_i32_1 = arith.constant 0 : i32
    return %c0_i32, %c0_i32_0 : i32, i32
  }
  func.func @transform_9(%arg0: i32) -> (i32, i32) {
    %c0_i32 = arith.constant 0 : i32
    %c0_i32_0 = arith.constant 0 : i32
    %c0_i32_1 = arith.constant 0 : i32
    return %c0_i32, %c0_i32_0 : i32, i32
  }
  func.func @transform_10(%arg0: i32) -> (i32, i32) {
    %c0_i32 = arith.constant 0 : i32
    %c0_i32_0 = arith.constant 0 : i32
    %c0_i32_1 = arith.constant 0 : i32
    return %c0_i32, %c0_i32_0 : i32, i32
  }
  func.func @transform_11(%arg0: i32) -> (i32, i32) {
    %c0_i32 = arith.constant 0 : i32
    %c0_i32_0 = arith.constant 0 : i32
    %c0_i32_1 = arith.constant 0 : i32
    return %c0_i32, %c0_i32_0 : i32, i32
  }
  func.func @transform_12(%arg0: i32) -> (i32, i32, i32) {
    %c0_i32 = arith.constant 0 : i32
    %c0_i32_0 = arith.constant 0 : i32
    %c0_i32_1 = arith.constant 0 : i32
    return %arg0, %c0_i32, %c0_i32_0 : i32, i32, i32
  }
}

</mosaic_0001>

<bundles_post_ra>
// kernel: tpu_custom_call.1
= control target key start
LH: loop header
LB: loop body
LE: loop exit
PB: predicated region body
PF: predicated region fallthrough
CT: control target
= control target key end

     0   :  { %s1474_s0 = inlined_call_operand.vmem [shape: bf16[2,16,48], index: 0, kind: input, shape index: {}]   ;;  %s1475_s1 = inlined_call_operand.vmem [shape: bf16[32,32], index: 1, kind: input, shape index: {}]   ;;  %s1476_s2 = inlined_call_operand.vmem [shape: f32[32,1], index: 2, kind: input, shape index: {}]   ;;  %s1477_s3 = inlined_call_operand.vmem [shape: f32[1,16], index: 3, kind: input, shape index: {}]   ;;  %s1478_s4 = inlined_call_operand.vmem [shape: f32[32,8], index: 4, kind: input, shape index: {}]   ;;  %s1479_s5 = inlined_call_operand.vmem [shape: bf16[8,32], index: 5, kind: input, shape index: {}]   ;;  %s1480_s6 = inlined_call_operand.vmem [shape: bf16[48,32], index: 6, kind: input, shape index: {}]   ;;  %s1481_s7 = inlined_call_operand.vmem [shape: f32[1,32], index: 7, kind: input, shape index: {}]   ;;  %s1482_s8 = inlined_call_operand.vmem [shape: bf16[32,32], index: 8, kind: input, shape index: {}]   ;;  %s1483_s9 = inlined_call_operand.vmem [shape: f32[1,32], index: 9, kind: input, shape index: {}]   ;;  %s1484_s10 = inlined_call_operand.vmem [shape: bf16[32,32], index: 10, kind: input, shape index: {}]   ;;  %s1485_s11 = inlined_call_operand.vmem [shape: f32[1,32], index: 11, kind: input, shape index: {}]   ;;  %s1486_s12 = inlined_call_operand.hbm [shape: f32[2,8,32], index: 12, kind: output, shape index: {}]  }
   0x1   :  { %1488 = sst [smem:[#allocation8_spill]] %s1474_s0 }
   0x2   :  { %1489 = sst [smem:[#allocation9_spill]] %s1475_s1 }
   0x3   :  { %17 = vsyncpa [#allocation4], 0 }
   0x4   :  { %19 = vsyncpa [#allocation4 + $0x1], 0  ;;  %s1263_s21 = smov 0   ;;  %s1265_s22 = smov 0  }
   0x5   :  { %s1267_s23 = smov 0   ;;  %s1269_s24 = smov 0  }
   0x6 LB: > { %1490 = sst [smem:[#allocation6_spill]] %s1186_s23  ;;  %s1284_s25 = sadd.s32 4294967295, %s1190_s24   ;;  %s1190_s24 = sphi %s1269_s24, %s1500_s24   ;;  %s1186_s23 = sphi %s1267_s23, %s1497_s23   ;;  %s1182_s22 = sphi %s1265_s22, %s1499_s22   ;;  %s1178_s21 = sphi %s1263_s21, %s1498_s21  }
   0x7   : > { %s977_s26 = sadd.s32 4294967294, %s1190_s24   ;;  %s1288_s27 = sadd.s32 1, %s1190_s24  }
   0x8   : > { %s289_s28 = sadd.s32 1, %s1186_s23  ;;  %s286_s29 = ssub.s32 %s1190_s24, %s1288_s27 }
   0x9   : > { %p299_p0 = scmp.ne.s32.totalorder %s1186_s23, %s1182_s22  ;;  %p287_p1 = scmp.eq.s32.totalorder %s286_s29, 0 }
   0xa   : > { %p300_p2 = scmp.eq.s32.totalorder %s1284_s25, 1  ;;  %p305_p3 = scmp.ne.s32.totalorder %s1182_s22, %s1178_s21 }
   0xb   : > { %p306_p4 = scmp.eq.s32.totalorder %s977_s26, 1  ;;  %p980_p7 = scmp.ge.s32.totalorder %s1190_s24, 1 }
   0xc   : > { %s1299_s30 = scalar_select %p287_p1, %s1186_s23, %s289_s28  }
   0xd   : > { %p1301_p5 = por %p300_p2, %p299_p0  ;;  %p1305_p6 = por %p306_p4, %p305_p3 }
   0xe   : > { %1491 = sst [smem:[#allocation7_spill]] %s1299_s30  ;;  %p365_p8 = scmp.lt.s32.totalorder %s1190_s24, 3 }
  0x10   : > { %p366_p9 = pnand %p980_p7, %p365_p8 }
  0x11   : > { %p407_p10 = scmp.lt.s32.totalorder (!%p366_p9), %s1284_s25, 1  ;;  %s1494_s0 = sld [smem:[#allocation8_spill]] (!%p366_p9) }
  0x12   : > { %369 = sbr.rel (%p366_p9) target bundleno = 968 (0x3c8), region = 68  ;;  %s1193_s26 = smov (!%p366_p9), 120  }
  0x13   : > { %s1495_s1 = sld [smem:[#allocation9_spill]] (!%p366_p9)  ;;  %s1194_s29 = smov (!%p366_p9), 112  }
  0x14   : > { %s1197_s18 = smov (!%p366_p9), 16   ;;  %s404_s28 = sand.u32 (!%p366_p9), 1, %s1182_s22  }
  0x17   : > { %v1045_v0 = vld [vmem:[%s1480_s6 + $0x10] sm:$0xff]  ;;  %v1044_v1 = vld [vmem:[%s1480_s6 + $0x8] sm:$0xff]  ;;  %s408_s19 = scalar_select %p407_p10, %s1284_s25, 1  ;;  %v1043_v2 = vld [vmem:[%s1480_s6] sm:$0xff]  ;;  %vm448_vm0 = vcmask 392192   ;;  %v1192_v8 = vmov 0  }
  0x18   : > { %457 = vmatpush.bf16.msra.mxu0 %v1045_v0  ;;  %v1049_v4 = vld [vmem:[%s1482_s8 + $0x8] sm:$0xff]  ;;  %v1048_v5 = vld [vmem:[%s1482_s8] sm:$0xff]  ;;  %1098 = vset.pattern.permute.xlu1 %v1192_v8  ;;  %vm559_vm1 = vcmask 64512   ;;  %v474_v12 = vld [vmem:[%s1476_s2 + $0x18] sm:$0xff]  ;;  %vm505_vm2 = vcmask 261120   ;;  %vm680_vm3 = vcmask 1043456  }
  0x19   : > { %s1041_s20 = sshll.u32 %s408_s19, 3  ;;  %666 = vmatpush.bf16.msra.mxu2 %v1049_v4  ;;  %v471_v6 = vld [vmem:[%s1476_s2] sm:$0xff]  ;;  %v472_v7 = vld [vmem:[%s1476_s2 + $0x8] sm:$0xff]  ;;  %1097 = vset.pattern.permute.xlu0 %v1192_v8  ;;  %v473_v23 = vld [vmem:[%s1476_s2 + $0x10] sm:$0xff]  ;;  %vm546_vm4 = vcmask 130048   ;;  %vm861_vm5 = vcmask 261248  }
  0x1a   : > { %s411_s15 = scalar_lea.vmem %s1494_s0, %s1041_s20  ;;  %477 = vperm.xlu1 %1098, %v471_v6   ;;  %482 = vperm.xlu0 %1097, %v472_v7   ;;  %v1100_v10 = vld [vmem:[%s1481_s7] ss:$0 sm:$0xff]  ;;  %v1343_v11 = vld [vmem:[%s1478_s4 + $0x8] sm:$0xff]  ;;  %v1373_v25 = vld [vmem:[%s1478_s4 + $0x18] sm:$0xff] }
  0x1b   : > { %v1042_v3 = vld [vmem:[%s411_s15] sm:$0xff]  ;;  %1099 = vset.pattern.permute.xlu2 %v1192_v8  ;;  %v563_v13 = vsel %vm559_vm1, %v1343_v11, -inf  ;;  %v1047_v24 = vld [vmem:[%s1495_s1 + $0x8] sm:$0xff]  ;;  %v569_v26 = vsel %vm559_vm1, %v1373_v25, -inf  ;;  %s1195_s15 = smov 104   ;;  %v1402_v0 = vld [vmem:[%s1478_s4 + $0x10] sm:$0xff] }
  0x1c   : > { %458 = vmatpush.bf16.msra.mxu0 %v1044_v1  ;;  %v676_v14 = vld [vmem:[%s1479_s5] sm:$0xf]  ;;  %564 = vmax.xlane.f32.xlu2 %v563_v13  ;;  %v566_v1 = vsel %vm559_vm1, %v1402_v0, -inf }
  0x1d   : > { %667 = vmatpush.bf16.msra.mxu2 %v1048_v5  ;;  %v721_v15 = vunpack.c.l.b16 %v676_v14  ;;  %v1046_v22 = vld [vmem:[%s1495_s1] sm:$0xff]  ;;  %v682_v29 = vsel %vm680_vm3, %v676_v14, 0 }
  0x1e   : > { %v542_v27 = vld [vmem:[%s1478_s4] sm:$0xff]  ;;  %691 = vmatpush.bf16.msra.mxu3 %v682_v29 }
  0x1f   : > { %v1353_v19 = vpack.c.b16 %v721_v15, %v721_v15  ;;  %v560_v28 = vsel %vm559_vm1, %v542_v27, -inf  ;;  %v1101_v32 = vld [vmem:[%s1483_s9] ss:$0 sm:$0xff] }
  0x20   : > { %459 = vmatpush.bf16.msra.mxu0 %v1043_v2  ;;  %v1102_v33 = vld [vmem:[%s1477_s3] ss:$0 sm:$0xff] }
  0x22   : > { %492 = vperm.xlu0 %1097, %v474_v12  }
  0x23   : > { %1000 = vmatmul.msk.bf16.vlgmr.msra.gmra.mxu0 %vm448_vm0, %v1042_v3 }
  0x2a   : > { %723 = vrot.lane.b32.xlu0 %v1353_v19, %s1193_s26 }
  0x34   : > { %487 = vperm.xlu2 %1099, %v473_v23  }
  0x5d   : > { %570 = vmax.xlane.f32.xlu2 %v569_v26 }
  0x65   : > { %561 = vmax.xlane.f32.xlu2 %v560_v28 }
  0x8c   : > { %v478_v31 = vpop.permute.xlu1 %477  ;;  %v483_v43 = vpop.permute.xlu0 %482 }
  0x8f   : > { %v565_v38 = vpop.xlane.xlu2 %564 }
  0x94   : > { %v493_v57 = vpop.permute.xlu0 %492 }
  0x97   : > { %v488_v52 = vpop.permute.xlu2 %487 }
  0x9c   : > { %v724_v62 = vpop.permute.xlu0 %723 }
  0x9d   : > { %v729_v63 = vsel %vm680_vm3, %v724_v62, 0 }
  0x9e   : > { %738 = vmatpush.bf16.msrb.mxu2 %v729_v63 }
  0xa0   : > { %v461_v9 = vpop.f32.mrf.mxu0 }
  0xa1   : > { %v462_v17 = vadd.f32 %v1100_v10, %v461_v9 }
  0xa8   : > { %v463_v16 = vpop.f32.mrf.mxu0 }
  0xa9   : > { %v464_v18 = vadd.f32 %v1100_v10, %v463_v16 }
  0xab   : > { %v466_v20 = vpack.c.bf16 %v464_v18, %v462_v17 }
  0xad   : > { %1019 = vmatmul.msk.bf16.vlgmr.msra.gmra.mxu2 %vm505_vm2, %v466_v20  ;;  %v513_v21 = vsel %vm505_vm2, %v466_v20, 0 }
  0xae   : > { %522 = vmatpush.bf16.xpose.msra.mxu1 %v513_v21 }
  0xb5   : > { %1009 = vmatmul.msk.bf16.vlgmr.msra.gmra.mxu1 %vm505_vm2, %v1046_v22 }
  0xc5   : > { %1010 = vmatmul.msk.bf16.gmra.mxu1 %vm505_vm2, %v1047_v24 }
  0xd0   : > { %v571_v2 = vpop.xlane.xlu2 %570 }
  0xd8   : > { %v562_v3 = vpop.xlane.xlu2 %561 }
 0x130   : > { %v669_v30 = vpop.f32.mrf.mxu2 }
 0x131   : > { %v670_v36 = vadd.f32 %v1101_v32, %v669_v30 }
 0x132   : > { %v524_v34 = vpop.f32.mrf.mxu1 }
 0x133   : > { %v525_v35 = vadd.f32 %v524_v34, %v478_v31  ;;  %v674_v41 = vpack.c.bf16 %v670_v36, %v670_v36 }
 0x135   : > { %v538_v37 = vadd.f32 %v1102_v33, %v525_v35  ;;  %v699_v47 = vunpack.c.l.b16 %v674_v41 }
 0x137   : > { %v547_v39 = vsel %vm546_vm4, %v538_v37, -inf }
 0x138   : > { %v671_v40 = vpop.f32.mrf.mxu2  ;;  %548 = vmax.xlane.f32.xlu0 %v547_v39 }
 0x139   : > { %v672_v42 = vadd.f32 %v1101_v32, %v671_v40 }
 0x13a   : > { %v526_v44 = vpop.f32.mrf.mxu1 }
 0x13b   : > { %v675_v45 = vpack.c.bf16 %v672_v42, %v672_v42  ;;  %v527_v46 = vadd.f32 %v526_v44, %v483_v43 }
 0x13d   : > { %v700_v48 = vunpack.c.l.b16 %v675_v45  ;;  %v539_v49 = vadd.f32 %v1102_v33, %v527_v46 }
 0x13f   : > { %v701_v50 = vpack.c.b16 %v700_v48, %v699_v47  ;;  %v550_v51 = vsel %vm546_vm4, %v539_v49, -inf }
 0x140   : > { %551 = vmax.xlane.f32.xlu1 %v550_v51 }
 0x141   : > { %713 = vmatpush.bf16.msrb.mxu3 %v701_v50 }
 0x142   : > { %v529_v53 = vpop.f32.mrf.mxu1 }
 0x143   : > { %v530_v54 = vadd.f32 %v529_v53, %v488_v52 }
 0x145   : > { %v1390_v55 = vadd.f32 %v1102_v33, %v530_v54 }
 0x147   : > { %v553_v56 = vsel %vm546_vm4, %v1390_v55, -inf }
 0x148   : > { %554 = vmax.xlane.f32.xlu2 %v553_v56 }
 0x14a   : > { %v531_v58 = vpop.f32.mrf.mxu1 }
 0x14b   : > { %v532_v59 = vadd.f32 %v531_v58, %v493_v57 }
 0x14d   : > { %v541_v60 = vadd.f32 %v1102_v33, %v532_v59 }
 0x14f   : > { %v556_v61 = vsel %vm546_vm4, %v541_v60, -inf }
 0x150   : > { %557 = vmax.xlane.f32.xlu0 %v556_v61 }
 0x159   : > { %744 = vrot.lane.b32.xlu1 %v701_v50, %s1193_s26  ;;  %s1196_s26 = smov 8  }
 0x160   : > { %770 = vrot.lane.b32.xlu2 %v1353_v19, %s1194_s29 }
 0x161   : > { %832 = vrot.lane.b32.xlu1 %v701_v50, %s1195_s15 }
 0x164   : > { %811 = vrot.lane.b32.xlu0 %v1353_v19, %s1195_s15  ;;  %s981_s15 = sshll.u32 %s404_s28, 3 }
 0x165   : > { %s406_s30 = scalar_lea.vmem [#allocation3], %s981_s15  ;;  %s1148_s15 = scalar_lea.hbm %s1486_s12, 16 }
 0x166   : > { %s915_s20 = sshll.u32 %s406_s30, 4  ;;  %s916_s20 = int_to_ptr.vmem [resolvable:$true] %s915_s20 }
 0x16c   : > { %791 = vrot.lane.b32.xlu0 %v701_v50, %s1194_s29  ;;  %s1038_s29 = sshll.u32 %s1284_s25, 3  ;;  %s903_s25 = scalar_lea.sflag [#allocation4], %s404_s28 }
 0x18b   : > { %567 = vmax.xlane.f32.xlu1 %v566_v1 }
 0x1ab   : > { %v549_v4 = vpop.xlane.xlu0 %548 }
 0x1ac   : > { %v572_v5 = vmax.f32 %v549_v4, %v562_v3 }
 0x1ae   : > { %v588_v6 = vsub.f32 %v542_v27, %v572_v5  ;;  %v576_v16 = vsub.f32 %v538_v37, %v572_v5 }
 0x1b0   : > { %v592_v7 = vmul.f32 1.442695, %v588_v6  ;;  %v580_v18 = vmul.f32 1.442695, %v576_v16 }
 0x1b2   : > { %1104 = vpow2.f32 %v592_v7 }
 0x1b3   : > { %v552_v8 = vpop.xlane.xlu1 %551 }
 0x1b4   : > { %v573_v9 = vmax.f32 %v552_v8, %v565_v38 }
 0x1b6   : > { %v577_v10 = vsub.f32 %v539_v49, %v573_v9  ;;  %v589_v12 = vsub.f32 %v1343_v11, %v573_v9 }
 0x1b8   : > { %v582_v13 = vmul.f32 1.442695, %v577_v10  ;;  %v594_v14 = vmul.f32 1.442695, %v589_v12  ;;  %v1105_v15 = vpop.eup %1104 }
 0x1b9   : > { %v636_v17 = vpack.c.bf16 %v1105_v15, %v1105_v15  ;;  %v612_v41 = vsel %vm559_vm1, %v1105_v15, 0.0 }
 0x1ba   : > { %1106 = vpow2.f32 %v582_v13 }
 0x1bb   : > { %1108 = vpow2.f32 %v594_v14  ;;  %1020 = vmatmul.msk.bf16.vlgmr.msra.gmra.mxu3 %vm559_vm1, %v636_v17  ;;  %v555_v44 = vpop.xlane.xlu2 %554 }
 0x1bc   : > { %1110 = vpow2.f32 %v580_v18 }
 0x1c0   : > { %v1107_v19 = vpop.eup %1106 }
 0x1c1   : > { %v1109_v20 = vpop.eup %1108  ;;  %v603_v21 = vsel %vm546_vm4, %v1107_v19, 0.0  ;;  %v633_v33 = vpack.c.bf16 %v1107_v19, %v1107_v19 }
 0x1c2   : > { %604 = vadd.xlane.f32.xlu1 %v603_v21  ;;  %v637_v22 = vpack.c.bf16 %v1109_v20, %v1109_v20  ;;  %v1111_v27 = vpop.eup %1110  ;;  %v615_v30 = vsel %vm559_vm1, %v1109_v20, 0.0 }
 0x1c3   : > { %v558_v23 = vpop.xlane.xlu0 %557  ;;  %v632_v31 = vpack.c.bf16 %v1111_v27, %v1111_v27  ;;  %v771_v45 = vpop.permute.xlu2 %770 }
 0x1c4   : > { %1022 = vmatmul.msk.bf16.vlgmr.msrb.gmra.mxu2 %vm559_vm1, %v637_v22  ;;  %v575_v11 = vmax.f32 %v558_v23, %v571_v2  ;;  %v776_v46 = vsel %vm680_vm3, %v771_v45, 0  ;;  %v1103_v45 = vld [vmem:[%s1485_s11] ss:$0 sm:$0xff] }
 0x1c5   : > { %785 = vmatpush.bf16.msra.mxu3 %v776_v46 }
 0x1c6   : > { %v579_v24 = vsub.f32 %v541_v60, %v575_v11  ;;  %v591_v26 = vsub.f32 %v1373_v25, %v575_v11 }
 0x1c8   : > { %v586_v28 = vmul.f32 1.442695, %v579_v24  ;;  %v598_v29 = vmul.f32 1.442695, %v591_v26 }
 0x1ca   : > { %1112 = vpow2.f32 %v586_v28  ;;  %616 = vadd.xlane.f32.xlu1 %v615_v30 }
 0x1cb   : > { %1114 = vpow2.f32 %v598_v29  ;;  %v745_v32 = vpop.permute.xlu1 %744  ;;  %1021 = vmatmul.msk.bf16.vlgmr.msrb.gmra.mxu3 %vm546_vm4, %v632_v31 }
 0x1cc   : > { %757 = vmatpush.bf16.msrb.mxu0 %v745_v32 }
 0x1cf   : > { %1023 = vmatmul.msk.bf16.vlgmr.msrb.gmra.mxu0 %vm546_vm4, %v633_v33 }
 0x1d0   : > { %v1113_v34 = vpop.eup %1112 }
 0x1d1   : > { %v1115_v35 = vpop.eup %1114  ;;  %v609_v25 = vsel %vm546_vm4, %v1113_v34, 0.0  ;;  %v635_v42 = vpack.c.bf16 %v1113_v34, %v1113_v34 }
 0x1d2   : > { %v621_v36 = vsel %vm559_vm1, %v1115_v35, 0.0  ;;  %610 = vadd.xlane.f32.xlu0 %v609_v25  ;;  %v639_v40 = vpack.c.bf16 %v1115_v35, %v1115_v35 }
 0x1d3   : > { %622 = vadd.xlane.f32.xlu2 %v621_v36  ;;  %v833_v37 = vpop.permute.xlu1 %832 }
 0x1d4   : > { %845 = vmatpush.bf16.msra.mxu0 %v833_v37 }
 0x1d6   : > { %v812_v38 = vpop.permute.xlu0 %811 }
 0x1d7   : > { %v817_v39 = vsel %vm680_vm3, %v812_v38, 0 }
 0x1d8   : > { %826 = vmatpush.bf16.msra.mxu2 %v817_v39 }
 0x1db   : > { %613 = vadd.xlane.f32.xlu2 %v612_v41  ;;  %1026 = vmatmul.msk.bf16.vlgmr.msra.gmra.mxu2 %vm559_vm1, %v639_v40  ;;  %v1051_v40 = vld [vmem:[%s1484_s10 + $0x8] sm:$0xff]  ;;  %v1050_v41 = vld [vmem:[%s1484_s10] sm:$0xff] }
 0x1dc   : > { %894 = vmatpush.bf16.msrb.mxu3 %v1051_v40 }
 0x1de   : > { %v792_v43 = vpop.permute.xlu0 %791 }
 0x1df   : > { %804 = vmatpush.bf16.msrb.mxu1 %v792_v43  ;;  %1027 = vmatmul.msk.bf16.vlgmr.msra.gmra.mxu0 %vm546_vm4, %v635_v42 }
 0x1e0   : > { %895 = vmatpush.bf16.msrb.mxu3 %v1050_v41 }
 0x1fe   : > { %v568_v47 = vpop.xlane.xlu1 %567 }
 0x1ff   : > { %v574_v48 = vmax.f32 %v555_v44, %v568_v47 }
 0x201   : > { %v578_v49 = vsub.f32 %v1390_v55, %v574_v48  ;;  %v590_v50 = vsub.f32 %v1402_v0, %v574_v48  ;;  %v600_v55 = vsel %vm546_vm4, %v1111_v27, 0.0 }
 0x203   : > { %v584_v51 = vmul.f32 1.442695, %v578_v49  ;;  %v596_v52 = vmul.f32 1.442695, %v590_v50 }
 0x205   : > { %1116 = vpow2.f32 %v584_v51 }
 0x206   : > { %1118 = vpow2.f32 %v596_v52 }
 0x20b   : > { %v1117_v53 = vpop.eup %1116 }
 0x20c   : > { %v1119_v54 = vpop.eup %1118  ;;  %v606_v56 = vsel %vm546_vm4, %v1117_v53, 0.0  ;;  %v634_v57 = vpack.c.bf16 %v1117_v53, %v1117_v53 }
 0x20d   : > { %v638_v58 = vpack.c.bf16 %v1119_v54, %v1119_v54  ;;  %607 = vadd.xlane.f32.xlu1 %v606_v56  ;;  %v618_v59 = vsel %vm559_vm1, %v1119_v54, 0.0 }
 0x20e   : > { %619 = vadd.xlane.f32.xlu0 %v618_v59  ;;  %1025 = vmatmul.msk.bf16.vlgmr.msrb.gmra.mxu1 %vm546_vm4, %v634_v57 }
 0x20f   : > { %1024 = vmatmul.msk.bf16.vlgmr.msra.gmra.mxu3 %vm559_vm1, %v638_v58 }
 0x216   : > { %601 = vadd.xlane.f32.xlu0 %v600_v55 }
 0x235   : > { %v605_v60 = vpop.xlane.xlu1 %604 }
 0x23d   : > { %v617_v62 = vpop.xlane.xlu1 %616 }
 0x23e   : > { %v693_v61 = vpop.f32.mrf.mxu3  ;;  %v625_v63 = vadd.f32 %v617_v62, %v605_v60 }
 0x240   : > { %1120 = vrcp.f32 %v625_v63 }
 0x245   : > { %v611_v10 = vpop.xlane.xlu0 %610 }
 0x246   : > { %v695_v0 = vpop.f32.mrf.mxu3  ;;  %v1121_v4 = vpop.eup %1120 }
 0x247   : > { %v740_v1 = vpop.f32.mrf.mxu2  ;;  %v623_v9 = vpop.xlane.xlu2 %622 }
 0x248   : > { %v627_v13 = vadd.f32 %v623_v9, %v611_v10 }
 0x24a   : > { %1122 = vrcp.f32 %v627_v13 }
 0x24c   : > { %v759_v2 = vpop.f32.mrf.mxu0 }
 0x24d   : > { %v760_v3 = vadd.f32 %v759_v2, %v740_v1 }
 0x24e   : > { %v715_v6 = vpop.f32.mrf.mxu3 }
 0x24f   : > { %v763_v5 = vmul.f32 %v1121_v4, %v760_v3  ;;  %v742_v7 = vpop.f32.mrf.mxu2  ;;  %v716_v8 = vadd.f32 %v715_v6, %v693_v61  ;;  %v614_v28 = vpop.xlane.xlu2 %613 }
 0x250   : > { %v1123_v18 = vpop.eup %1122 }
 0x251   : > { %765 = vrot.lane.b32.xlu0 %v763_v5, %s1196_s26 }
 0x254   : > { %v761_v12 = vpop.f32.mrf.mxu0 }
 0x256   : > { %v717_v14 = vpop.f32.mrf.mxu3 }
 0x25c   : > { %v847_v15 = vpop.f32.mrf.mxu0 }
 0x25e   : > { %v828_v16 = vpop.f32.mrf.mxu2 }
 0x25f   : > { %v848_v17 = vadd.f32 %v847_v15, %v828_v16 }
 0x261   : > { %v851_v19 = vmul.f32 %v1123_v18, %v848_v17 }
 0x263   : > { %853 = vrot.lane.b32.xlu1 %v851_v19, %s1196_s26  ;;  %s913_s26 = scalar_lea.hbm %s1486_s12, %s1038_s29 }
 0x264   : > { %v849_v20 = vpop.f32.mrf.mxu0  ;;  %s917_s23 = sshll.u32 %s913_s26, 4  ;;  %s918_s23 = int_to_ptr.hbm [resolvable:$true] %s917_s23 }
 0x265   : > { %s1142_s0 = sshra.s32 %s918_s23, 4  ;;  %s1143_s0 = int_to_ptr.hbm [resolvable:$true] %s1142_s0 }
 0x266   : > { %v830_v21 = vpop.f32.mrf.mxu2  ;;  %s1144_s1 = scalar_lea.hbm %s1143_s0, 8  ;;  %p1149_p0 = scmp.lt.s32.totalorder %s1143_s0, %s1486_s12 }
 0x267   : > { %p1145_p11 = scmp.ne.s32.totalorder %s1143_s0, %s1144_s1  ;;  %p1150_p1 = scmp.lt.s32.totalorder %s1148_s15, %s1144_s1 }
 0x269   : > { %p1146_p12 = pnand %p1145_p11, %p1301_p5  ;;  %p1151_p2 = por %p1150_p1, %p1149_p0 }
 0x26b   : > { %p1147_p13 = pneg %p1146_p12 }
 0x26d   : > { %p1152_p3 = pnand %p1151_p2, %p1147_p13 }
 0x280   : > { %v608_v34 = vpop.xlane.xlu1 %607 }
 0x281   : > { %v620_v26 = vpop.xlane.xlu0 %619 }
 0x282   : > { %v626_v35 = vadd.f32 %v620_v26, %v608_v34 }
 0x289   : > { %v602_v27 = vpop.xlane.xlu0 %601 }
 0x28a   : > { %v624_v29 = vadd.f32 %v614_v28, %v602_v27 }
 0x28b   : > { %v806_v22 = vpop.f32.mrf.mxu1 }
 0x28c   : > { %1124 = vrcp.f32 %v624_v29 }
 0x28d   : > { %1126 = vrcp.f32 %v626_v35 }
 0x292   : > { %v787_v23 = vpop.f32.mrf.mxu3  ;;  %v1125_v30 = vpop.eup %1124 }
 0x293   : > { %v808_v11 = vpop.f32.mrf.mxu1  ;;  %v719_v31 = vmul.f32 %v1125_v30, %v716_v8  ;;  %v807_v25 = vadd.f32 %v806_v22, %v787_v23  ;;  %v1127_v36 = vpop.eup %1126 }
 0x295   : > { %v810_v37 = vmul.f32 %v1127_v36, %v807_v25 }
 0x29a   : > { %v789_v24 = vpop.f32.mrf.mxu3 }
 0x2c3   : > { %v766_v32 = vpop.permute.xlu0 %765 }
 0x2c4   : > { %v768_v33 = vsel %vm559_vm1, %v719_v31, %v766_v32 }
 0x2c5   : > { %769 = vst.msk [vmem:[#allocation2] sm:$0xff] %vm546_vm4, %v768_v33 }
 0x2d5   : > { %v854_v38 = vpop.permute.xlu1 %853 }
 0x2d6   : > { %v856_v39 = vsel %vm559_vm1, %v810_v37, %v854_v38 }
 0x2d7   : > { %858 = vrot.lane.b32.xlu2 %v856_v39, %s1197_s18 }
 0x331   : > { %v859_v42 = vpop.permute.xlu2 %858 }
 0x332   : > { %862 = vst.msk [vmem:[#allocation2] sm:$0xff] %vm861_vm5, %v859_v42 }
 0x339   : > { %v863_v43 = vld [vmem:[#allocation2] sm:$0xff] }
 0x33a   : > { %v864_v44 = vpack.c.bf16 %v863_v43, %v863_v43 }
 0x33c   : > { %1036 = vmatmul.msk.bf16.vlgmr.msrb.gmra.mxu3 %vm505_vm2, %v864_v44 }
 0x3bf   : > { %v897_v46 = vpop.f32.mrf.mxu3 }
 0x3c0   : > { %v898_v47 = vadd.f32 %v1103_v45, %v897_v46 }
 0x3c2   : > { %901 = vst.msk [vmem:[%s406_s30] sm:$0xff] %vm505_vm2, %v898_v47 }
 0x3c3   : > { %1155 = shalt.err (!%p1152_p3)
}
 0x3c4   : > { %1052 = dma.vmem_to_hbm [thread:$0]  (%p1301_p5), %s916_s20, 128, %s918_s23, %s903_s25  }
 0x3c7   : > { %v899_v48 = vpop.f32.mrf.mxu3 }
 0x3c8 PF: > { %p1058_p4 = scmp.ge.s32.totalorder %s1190_s24, 2  ;;  %s929_s28 = sand.u32 1, %s1178_s21  }
 0x3c9   : > { %s930_s18 = scalar_lea.sflag [#allocation4], %s929_s28 }
 0x3ca   : > { %p1055_p7 = pnand %p1058_p4, %p1305_p6 }
 0x3cc   : > { %p1056_p8 = pneg %p1055_p7 }
 0x3ce   : > { %1173 = dma.done.wait (%p1056_p8), %s930_s18, 128  }
 0x3cf   : > { %1175 = vsyncadd (%p1056_p8), %s930_s18, 4294967168  ;;  %s1496_s0 = sld [smem:[#allocation6_spill]]  ;;  %p22_p9 = scmp.ge.s32.totalorder %s1288_s27, 4  }
 0x3d0   : > { %s1497_s23 = sld [smem:[#allocation7_spill]]  ;;  %s1498_s21 = smov %s1182_s22 }
 0x3d1   : > { %s1500_s24 = smov %s1288_s27  ;;  %24 = sbr.rel (!%p22_p9) target bundleno = 6 (0x6), region = 103 }
 0x3d5   : > { %s1499_s22 = smov %s1496_s0 }
 0x3d6   :  { %936 = vsyncpa [#allocation4], 1 }
 0x3d7   :  { %938 = vsyncpa [#allocation4 + $0x1], 1 }

// kernel: tpu_custom_call.1
= control target key start
LH: loop header
LB: loop body
LE: loop exit
PB: predicated region body
PF: predicated region fallthrough
CT: control target
= control target key end

     0   :  { %s1474_s0 = inlined_call_operand.vmem [shape: bf16[2,16,48], index: 0, kind: input, shape index: {}]   ;;  %s1475_s1 = inlined_call_operand.vmem [shape: bf16[32,32], index: 1, kind: input, shape index: {}]   ;;  %s1476_s2 = inlined_call_operand.vmem [shape: f32[32,1], index: 2, kind: input, shape index: {}]   ;;  %s1477_s3 = inlined_call_operand.vmem [shape: f32[1,16], index: 3, kind: input, shape index: {}]   ;;  %s1478_s4 = inlined_call_operand.vmem [shape: f32[32,8], index: 4, kind: input, shape index: {}]   ;;  %s1479_s5 = inlined_call_operand.vmem [shape: bf16[8,32], index: 5, kind: input, shape index: {}]   ;;  %s1480_s6 = inlined_call_operand.vmem [shape: bf16[48,32], index: 6, kind: input, shape index: {}]   ;;  %s1481_s7 = inlined_call_operand.vmem [shape: f32[1,32], index: 7, kind: input, shape index: {}]   ;;  %s1482_s8 = inlined_call_operand.vmem [shape: bf16[32,32], index: 8, kind: input, shape index: {}]   ;;  %s1483_s9 = inlined_call_operand.vmem [shape: f32[1,32], index: 9, kind: input, shape index: {}]   ;;  %s1484_s10 = inlined_call_operand.vmem [shape: bf16[32,32], index: 10, kind: input, shape index: {}]   ;;  %s1485_s11 = inlined_call_operand.vmem [shape: f32[1,32], index: 11, kind: input, shape index: {}]   ;;  %s1486_s12 = inlined_call_operand.hbm [shape: f32[2,8,32], index: 12, kind: output, shape index: {}]  }
   0x1   :  { %1488 = sst [smem:[#allocation8_spill]] %s1474_s0 }
   0x2   :  { %1489 = sst [smem:[#allocation9_spill]] %s1475_s1 }
   0x3   :  { %17 = vsyncpa [#allocation4], 0 }
   0x4   :  { %19 = vsyncpa [#allocation4 + $0x1], 0  ;;  %s1263_s21 = smov 0   ;;  %s1265_s22 = smov 0  }
   0x5   :  { %s1267_s23 = smov 0   ;;  %s1269_s24 = smov 0  }
   0x6 LB: > { %1490 = sst [smem:[#allocation6_spill]] %s1186_s23  ;;  %s1284_s25 = sadd.s32 4294967295, %s1190_s24   ;;  %s1190_s24 = sphi %s1269_s24, %s1500_s24   ;;  %s1186_s23 = sphi %s1267_s23, %s1497_s23   ;;  %s1182_s22 = sphi %s1265_s22, %s1499_s22   ;;  %s1178_s21 = sphi %s1263_s21, %s1498_s21  }
   0x7   : > { %s977_s26 = sadd.s32 4294967294, %s1190_s24   ;;  %s1288_s27 = sadd.s32 1, %s1190_s24  }
   0x8   : > { %s289_s28 = sadd.s32 1, %s1186_s23  ;;  %s286_s29 = ssub.s32 %s1190_s24, %s1288_s27 }
   0x9   : > { %p299_p0 = scmp.ne.s32.totalorder %s1186_s23, %s1182_s22  ;;  %p287_p1 = scmp.eq.s32.totalorder %s286_s29, 0 }
   0xa   : > { %p300_p2 = scmp.eq.s32.totalorder %s1284_s25, 1  ;;  %p305_p3 = scmp.ne.s32.totalorder %s1182_s22, %s1178_s21 }
   0xb   : > { %p306_p4 = scmp.eq.s32.totalorder %s977_s26, 1  ;;  %p980_p7 = scmp.ge.s32.totalorder %s1190_s24, 1 }
   0xc   : > { %s1299_s30 = scalar_select %p287_p1, %s1186_s23, %s289_s28  }
   0xd   : > { %p1301_p5 = por %p300_p2, %p299_p0  ;;  %p1305_p6 = por %p306_p4, %p305_p3 }
   0xe   : > { %1491 = sst [smem:[#allocation7_spill]] %s1299_s30  ;;  %p365_p8 = scmp.lt.s32.totalorder %s1190_s24, 3 }
  0x10   : > { %p366_p9 = pnand %p980_p7, %p365_p8 }
  0x11   : > { %p407_p10 = scmp.lt.s32.totalorder (!%p366_p9), %s1284_s25, 1  ;;  %s1494_s0 = sld [smem:[#allocation8_spill]] (!%p366_p9) }
  0x12   : > { %369 = sbr.rel (%p366_p9) target bundleno = 968 (0x3c8), region = 68  ;;  %s1193_s26 = smov (!%p366_p9), 120  }
  0x13   : > { %s1495_s1 = sld [smem:[#allocation9_spill]] (!%p366_p9)  ;;  %s1194_s29 = smov (!%p366_p9), 112  }
  0x14   : > { %s1197_s18 = smov (!%p366_p9), 16   ;;  %s404_s28 = sand.u32 (!%p366_p9), 1, %s1182_s22  }
  0x17   : > { %v1045_v0 = vld [vmem:[%s1480_s6 + $0x10] sm:$0xff]  ;;  %v1044_v1 = vld [vmem:[%s1480_s6 + $0x8] sm:$0xff]  ;;  %s408_s19 = scalar_select %p407_p10, %s1284_s25, 1  ;;  %v1043_v2 = vld [vmem:[%s1480_s6] sm:$0xff]  ;;  %vm448_vm0 = vcmask 392192   ;;  %v1192_v8 = vmov 0  }
  0x18   : > { %457 = vmatpush.bf16.msra.mxu0 %v1045_v0  ;;  %v1049_v4 = vld [vmem:[%s1482_s8 + $0x8] sm:$0xff]  ;;  %v1048_v5 = vld [vmem:[%s1482_s8] sm:$0xff]  ;;  %1098 = vset.pattern.permute.xlu1 %v1192_v8  ;;  %vm559_vm1 = vcmask 64512   ;;  %v474_v12 = vld [vmem:[%s1476_s2 + $0x18] sm:$0xff]  ;;  %vm505_vm2 = vcmask 261120   ;;  %vm680_vm3 = vcmask 1043456  }
  0x19   : > { %s1041_s20 = sshll.u32 %s408_s19, 3  ;;  %666 = vmatpush.bf16.msra.mxu2 %v1049_v4  ;;  %v471_v6 = vld [vmem:[%s1476_s2] sm:$0xff]  ;;  %v472_v7 = vld [vmem:[%s1476_s2 + $0x8] sm:$0xff]  ;;  %1097 = vset.pattern.permute.xlu0 %v1192_v8  ;;  %v473_v23 = vld [vmem:[%s1476_s2 + $0x10] sm:$0xff]  ;;  %vm546_vm4 = vcmask 130048   ;;  %vm861_vm5 = vcmask 261248  }
  0x1a   : > { %s411_s15 = scalar_lea.vmem %s1494_s0, %s1041_s20  ;;  %477 = vperm.xlu1 %1098, %v471_v6   ;;  %482 = vperm.xlu0 %1097, %v472_v7   ;;  %v1100_v10 = vld [vmem:[%s1481_s7] ss:$0 sm:$0xff]  ;;  %v1343_v11 = vld [vmem:[%s1478_s4 + $0x8] sm:$0xff]  ;;  %v1373_v25 = vld [vmem:[%s1478_s4 + $0x18] sm:$0xff] }
  0x1b   : > { %v1042_v3 = vld [vmem:[%s411_s15] sm:$0xff]  ;;  %1099 = vset.pattern.permute.xlu2 %v1192_v8  ;;  %v563_v13 = vsel %vm559_vm1, %v1343_v11, -inf  ;;  %v1047_v24 = vld [vmem:[%s1495_s1 + $0x8] sm:$0xff]  ;;  %v569_v26 = vsel %vm559_vm1, %v1373_v25, -inf  ;;  %s1195_s15 = smov 104   ;;  %v1402_v0 = vld [vmem:[%s1478_s4 + $0x10] sm:$0xff] }
  0x1c   : > { %458 = vmatpush.bf16.msra.mxu0 %v1044_v1  ;;  %v676_v14 = vld [vmem:[%s1479_s5] sm:$0xf]  ;;  %564 = vmax.xlane.f32.xlu2 %v563_v13  ;;  %v566_v1 = vsel %vm559_vm1, %v1402_v0, -inf }
  0x1d   : > { %667 = vmatpush.bf16.msra.mxu2 %v1048_v5  ;;  %v721_v15 = vunpack.c.l.b16 %v676_v14  ;;  %v1046_v22 = vld [vmem:[%s1495_s1] sm:$0xff]  ;;  %v682_v29 = vsel %vm680_vm3, %v676_v14, 0 }
  0x1e   : > { %v542_v27 = vld [vmem:[%s1478_s4] sm:$0xff]  ;;  %691 = vmatpush.bf16.msra.mxu3 %v682_v29 }
  0x1f   : > { %v1353_v19 = vpack.c.b16 %v721_v15, %v721_v15  ;;  %v560_v28 = vsel %vm559_vm1, %v542_v27, -inf  ;;  %v1101_v32 = vld [vmem:[%s1483_s9] ss:$0 sm:$0xff] }
  0x20   : > { %459 = vmatpush.bf16.msra.mxu0 %v1043_v2  ;;  %v1102_v33 = vld [vmem:[%s1477_s3] ss:$0 sm:$0xff] }
  0x22   : > { %492 = vperm.xlu0 %1097, %v474_v12  }
  0x23   : > { %1000 = vmatmul.msk.bf16.vlgmr.msra.gmra.mxu0 %vm448_vm0, %v1042_v3 }
  0x2a   : > { %723 = vrot.lane.b32.xlu0 %v1353_v19, %s1193_s26 }
  0x34   : > { %487 = vperm.xlu2 %1099, %v473_v23  }
  0x5d   : > { %570 = vmax.xlane.f32.xlu2 %v569_v26 }
  0x65   : > { %561 = vmax.xlane.f32.xlu2 %v560_v28 }
  0x8c   : > { %v478_v31 = vpop.permute.xlu1 %477  ;;  %v483_v43 = vpop.permute.xlu0 %482 }
  0x8f   : > { %v565_v38 = vpop.xlane.xlu2 %564 }
  0x94   : > { %v493_v57 = vpop.permute.xlu0 %492 }
  0x97   : > { %v488_v52 = vpop.permute.xlu2 %487 }
  0x9c   : > { %v724_v62 = vpop.permute.xlu0 %723 }
  0x9d   : > { %v729_v63 = vsel %vm680_vm3, %v724_v62, 0 }
  0x9e   : > { %738 = vmatpush.bf16.msrb.mxu2 %v729_v63 }
  0xa0   : > { %v461_v9 = vpop.f32.mrf.mxu0 }
  0xa1   : > { %v462_v17 = vadd.f32 %v1100_v10, %v461_v9 }
  0xa8   : > { %v463_v16 = vpop.f32.mrf.mxu0 }
  0xa9   : > { %v464_v18 = vadd.f32 %v1100_v10, %v463_v16 }
  0xab   : > { %v466_v20 = vpack.c.bf16 %v464_v18, %v462_v17 }
  0xad   : > { %1019 = vmatmul.msk.bf16.vlgmr.msra.gmra.mxu2 %vm505_vm2, %v466_v20  ;;  %v513_v21 = vsel %vm505_vm2, %v466_v20, 0 }
  0xae   : > { %522 = vmatpush.bf16.xpose.msra.mxu1 %v513_v21 }
  0xb5   : > { %1009 = vmatmul.msk.bf16.vlgmr.msra.gmra.mxu1 %vm505_vm2, %v1046_v22 }
  0xc5   : > { %1010 = vmatmul.msk.bf16.gmra.mxu1 %vm505_vm2, %v1047_v24 }
  0xd0   : > { %v571_v2 = vpop.xlane.xlu2 %570 }
  0xd8   : > { %v562_v3 = vpop.xlane.xlu2 %561 }
 0x130   : > { %v669_v30 = vpop.f32.mrf.mxu2 }
 0x131   : > { %v670_v36 = vadd.f32 %v1101_v32, %v669_v30 }
 0x132   : > { %v524_v34 = vpop.f32.mrf.mxu1 }
 0x133   : > { %v525_v35 = vadd.f32 %v524_v34, %v478_v31  ;;  %v674_v41 = vpack.c.bf16 %v670_v36, %v670_v36 }
 0x135   : > { %v538_v37 = vadd.f32 %v1102_v33, %v525_v35  ;;  %v699_v47 = vunpack.c.l.b16 %v674_v41 }
 0x137   : > { %v547_v39 = vsel %vm546_vm4, %v538_v37, -inf }
 0x138   : > { %v671_v40 = vpop.f32.mrf.mxu2  ;;  %548 = vmax.xlane.f32.xlu0 %v547_v39 }
 0x139   : > { %v672_v42 = vadd.f32 %v1101_v32, %v671_v40 }
 0x13a   : > { %v526_v44 = vpop.f32.mrf.mxu1 }
 0x13b   : > { %v675_v45 = vpack.c.bf16 %v672_v42, %v672_v42  ;;  %v527_v46 = vadd.f32 %v526_v44, %v483_v43 }
 0x13d   : > { %v700_v48 = vunpack.c.l.b16 %v675_v45  ;;  %v539_v49 = vadd.f32 %v1102_v33, %v527_v46 }
 0x13f   : > { %v701_v50 = vpack.c.b16 %v700_v48, %v699_v47  ;;  %v550_v51 = vsel %vm546_vm4, %v539_v49, -inf }
 0x140   : > { %551 = vmax.xlane.f32.xlu1 %v550_v51 }
 0x141   : > { %713 = vmatpush.bf16.msrb.mxu3 %v701_v50 }
 0x142   : > { %v529_v53 = vpop.f32.mrf.mxu1 }
 0x143   : > { %v530_v54 = vadd.f32 %v529_v53, %v488_v52 }
 0x145   : > { %v1390_v55 = vadd.f32 %v1102_v33, %v530_v54 }
 0x147   : > { %v553_v56 = vsel %vm546_vm4, %v1390_v55, -inf }
 0x148   : > { %554 = vmax.xlane.f32.xlu2 %v553_v56 }
 0x14a   : > { %v531_v58 = vpop.f32.mrf.mxu1 }
 0x14b   : > { %v532_v59 = vadd.f32 %v531_v58, %v493_v57 }
 0x14d   : > { %v541_v60 = vadd.f32 %v1102_v33, %v532_v59 }
 0x14f   : > { %v556_v61 = vsel %vm546_vm4, %v541_v60, -inf }
 0x150   : > { %557 = vmax.xlane.f32.xlu0 %v556_v61 }
 0x159   : > { %744 = vrot.lane.b32.xlu1 %v701_v50, %s1193_s26  ;;  %s1196_s26 = smov 8  }
 0x160   : > { %770 = vrot.lane.b32.xlu2 %v1353_v19, %s1194_s29 }
 0x161   : > { %832 = vrot.lane.b32.xlu1 %v701_v50, %s1195_s15 }
 0x164   : > { %811 = vrot.lane.b32.xlu0 %v1353_v19, %s1195_s15  ;;  %s981_s15 = sshll.u32 %s404_s28, 3 }
 0x165   : > { %s406_s30 = scalar_lea.vmem [#allocation3], %s981_s15  ;;  %s1148_s15 = scalar_lea.hbm %s1486_s12, 16 }
 0x166   : > { %s915_s20 = sshll.u32 %s406_s30, 4  ;;  %s916_s20 = int_to_ptr.vmem [resolvable:$true] %s915_s20 }
 0x16c   : > { %791 = vrot.lane.b32.xlu0 %v701_v50, %s1194_s29  ;;  %s1038_s29 = sshll.u32 %s1284_s25, 3  ;;  %s903_s25 = scalar_lea.sflag [#allocation4], %s404_s28 }
 0x18b   : > { %567 = vmax.xlane.f32.xlu1 %v566_v1 }
 0x1ab   : > { %v549_v4 = vpop.xlane.xlu0 %548 }
 0x1ac   : > { %v572_v5 = vmax.f32 %v549_v4, %v562_v3 }
 0x1ae   : > { %v588_v6 = vsub.f32 %v542_v27, %v572_v5  ;;  %v576_v16 = vsub.f32 %v538_v37, %v572_v5 }
 0x1b0   : > { %v592_v7 = vmul.f32 1.442695, %v588_v6  ;;  %v580_v18 = vmul.f32 1.442695, %v576_v16 }
 0x1b2   : > { %1104 = vpow2.f32 %v592_v7 }
 0x1b3   : > { %v552_v8 = vpop.xlane.xlu1 %551 }
 0x1b4   : > { %v573_v9 = vmax.f32 %v552_v8, %v565_v38 }
 0x1b6   : > { %v577_v10 = vsub.f32 %v539_v49, %v573_v9  ;;  %v589_v12 = vsub.f32 %v1343_v11, %v573_v9 }
 0x1b8   : > { %v582_v13 = vmul.f32 1.442695, %v577_v10  ;;  %v594_v14 = vmul.f32 1.442695, %v589_v12  ;;  %v1105_v15 = vpop.eup %1104 }
 0x1b9   : > { %v636_v17 = vpack.c.bf16 %v1105_v15, %v1105_v15  ;;  %v612_v41 = vsel %vm559_vm1, %v1105_v15, 0.0 }
 0x1ba   : > { %1106 = vpow2.f32 %v582_v13 }
 0x1bb   : > { %1108 = vpow2.f32 %v594_v14  ;;  %1020 = vmatmul.msk.bf16.vlgmr.msra.gmra.mxu3 %vm559_vm1, %v636_v17  ;;  %v555_v44 = vpop.xlane.xlu2 %554 }
 0x1bc   : > { %1110 = vpow2.f32 %v580_v18 }
 0x1c0   : > { %v1107_v19 = vpop.eup %1106 }
 0x1c1   : > { %v1109_v20 = vpop.eup %1108  ;;  %v603_v21 = vsel %vm546_vm4, %v1107_v19, 0.0  ;;  %v633_v33 = vpack.c.bf16 %v1107_v19, %v1107_v19 }
 0x1c2   : > { %604 = vadd.xlane.f32.xlu1 %v603_v21  ;;  %v637_v22 = vpack.c.bf16 %v1109_v20, %v1109_v20  ;;  %v1111_v27 = vpop.eup %1110  ;;  %v615_v30 = vsel %vm559_vm1, %v1109_v20, 0.0 }
 0x1c3   : > { %v558_v23 = vpop.xlane.xlu0 %557  ;;  %v632_v31 = vpack.c.bf16 %v1111_v27, %v1111_v27  ;;  %v771_v45 = vpop.permute.xlu2 %770 }
 0x1c4   : > { %1022 = vmatmul.msk.bf16.vlgmr.msrb.gmra.mxu2 %vm559_vm1, %v637_v22  ;;  %v575_v11 = vmax.f32 %v558_v23, %v571_v2  ;;  %v776_v46 = vsel %vm680_vm3, %v771_v45, 0  ;;  %v1103_v45 = vld [vmem:[%s1485_s11] ss:$0 sm:$0xff] }
 0x1c5   : > { %785 = vmatpush.bf16.msra.mxu3 %v776_v46 }
 0x1c6   : > { %v579_v24 = vsub.f32 %v541_v60, %v575_v11  ;;  %v591_v26 = vsub.f32 %v1373_v25, %v575_v11 }
 0x1c8   : > { %v586_v28 = vmul.f32 1.442695, %v579_v24  ;;  %v598_v29 = vmul.f32 1.442695, %v591_v26 }
 0x1ca   : > { %1112 = vpow2.f32 %v586_v28  ;;  %616 = vadd.xlane.f32.xlu1 %v615_v30 }
 0x1cb   : > { %1114 = vpow2.f32 %v598_v29  ;;  %v745_v32 = vpop.permute.xlu1 %744  ;;  %1021 = vmatmul.msk.bf16.vlgmr.msrb.gmra.mxu3 %vm546_vm4, %v632_v31 }
 0x1cc   : > { %757 = vmatpush.bf16.msrb.mxu0 %v745_v32 }
 0x1cf   : > { %1023 = vmatmul.msk.bf16.vlgmr.msrb.gmra.mxu0 %vm546_vm4, %v633_v33 }
 0x1d0   : > { %v1113_v34 = vpop.eup %1112 }
 0x1d1   : > { %v1115_v35 = vpop.eup %1114  ;;  %v609_v25 = vsel %vm546_vm4, %v1113_v34, 0.0  ;;  %v635_v42 = vpack.c.bf16 %v1113_v34, %v1113_v34 }
 0x1d2   : > { %v621_v36 = vsel %vm559_vm1, %v1115_v35, 0.0  ;;  %610 = vadd.xlane.f32.xlu0 %v609_v25  ;;  %v639_v40 = vpack.c.bf16 %v1115_v35, %v1115_v35 }
 0x1d3   : > { %622 = vadd.xlane.f32.xlu2 %v621_v36  ;;  %v833_v37 = vpop.permute.xlu1 %832 }
 0x1d4   : > { %845 = vmatpush.bf16.msra.mxu0 %v833_v37 }
 0x1d6   : > { %v812_v38 = vpop.permute.xlu0 %811 }
 0x1d7   : > { %v817_v39 = vsel %vm680_vm3, %v812_v38, 0 }
 0x1d8   : > { %826 = vmatpush.bf16.msra.mxu2 %v817_v39 }
 0x1db   : > { %613 = vadd.xlane.f32.xlu2 %v612_v41  ;;  %1026 = vmatmul.msk.bf16.vlgmr.msra.gmra.mxu2 %vm559_vm1, %v639_v40  ;;  %v1051_v40 = vld [vmem:[%s1484_s10 + $0x8] sm:$0xff]  ;;  %v1050_v41 = vld [vmem:[%s1484_s10] sm:$0xff] }
 0x1dc   : > { %894 = vmatpush.bf16.msrb.mxu3 %v1051_v40 }
 0x1de   : > { %v792_v43 = vpop.permute.xlu0 %791 }
 0x1df   : > { %804 = vmatpush.bf16.msrb.mxu1 %v792_v43  ;;  %1027 = vmatmul.msk.bf16.vlgmr.msra.gmra.mxu0 %vm546_vm4, %v635_v42 }
 0x1e0   : > { %895 = vmatpush.bf16.msrb.mxu3 %v1050_v41 }
 0x1fe   : > { %v568_v47 = vpop.xlane.xlu1 %567 }
 0x1ff   : > { %v574_v48 = vmax.f32 %v555_v44, %v568_v47 }
 0x201   : > { %v578_v49 = vsub.f32 %v1390_v55, %v574_v48  ;;  %v590_v50 = vsub.f32 %v1402_v0, %v574_v48  ;;  %v600_v55 = vsel %vm546_vm4, %v1111_v27, 0.0 }
 0x203   : > { %v584_v51 = vmul.f32 1.442695, %v578_v49  ;;  %v596_v52 = vmul.f32 1.442695, %v590_v50 }
 0x205   : > { %1116 = vpow2.f32 %v584_v51 }
 0x206   : > { %1118 = vpow2.f32 %v596_v52 }
 0x20b   : > { %v1117_v53 = vpop.eup %1116 }
 0x20c   : > { %v1119_v54 = vpop.eup %1118  ;;  %v606_v56 = vsel %vm546_vm4, %v1117_v53, 0.0  ;;  %v634_v57 = vpack.c.bf16 %v1117_v53, %v1117_v53 }
 0x20d   : > { %v638_v58 = vpack.c.bf16 %v1119_v54, %v1119_v54  ;;  %607 = vadd.xlane.f32.xlu1 %v606_v56  ;;  %v618_v59 = vsel %vm559_vm1, %v1119_v54, 0.0 }
 0x20e   : > { %619 = vadd.xlane.f32.xlu0 %v618_v59  ;;  %1025 = vmatmul.msk.bf16.vlgmr.msrb.gmra.mxu1 %vm546_vm4, %v634_v57 }
 0x20f   : > { %1024 = vmatmul.msk.bf16.vlgmr.msra.gmra.mxu3 %vm559_vm1, %v638_v58 }
 0x216   : > { %601 = vadd.xlane.f32.xlu0 %v600_v55 }
 0x235   : > { %v605_v60 = vpop.xlane.xlu1 %604 }
 0x23d   : > { %v617_v62 = vpop.xlane.xlu1 %616 }
 0x23e   : > { %v693_v61 = vpop.f32.mrf.mxu3  ;;  %v625_v63 = vadd.f32 %v617_v62, %v605_v60 }
 0x240   : > { %1120 = vrcp.f32 %v625_v63 }
 0x245   : > { %v611_v10 = vpop.xlane.xlu0 %610 }
 0x246   : > { %v695_v0 = vpop.f32.mrf.mxu3  ;;  %v1121_v4 = vpop.eup %1120 }
 0x247   : > { %v740_v1 = vpop.f32.mrf.mxu2  ;;  %v623_v9 = vpop.xlane.xlu2 %622 }
 0x248   : > { %v627_v13 = vadd.f32 %v623_v9, %v611_v10 }
 0x24a   : > { %1122 = vrcp.f32 %v627_v13 }
 0x24c   : > { %v759_v2 = vpop.f32.mrf.mxu0 }
 0x24d   : > { %v760_v3 = vadd.f32 %v759_v2, %v740_v1 }
 0x24e   : > { %v715_v6 = vpop.f32.mrf.mxu3 }
 0x24f   : > { %v763_v5 = vmul.f32 %v1121_v4, %v760_v3  ;;  %v742_v7 = vpop.f32.mrf.mxu2  ;;  %v716_v8 = vadd.f32 %v715_v6, %v693_v61  ;;  %v614_v28 = vpop.xlane.xlu2 %613 }
 0x250   : > { %v1123_v18 = vpop.eup %1122 }
 0x251   : > { %765 = vrot.lane.b32.xlu0 %v763_v5, %s1196_s26 }
 0x254   : > { %v761_v12 = vpop.f32.mrf.mxu0 }
 0x256   : > { %v717_v14 = vpop.f32.mrf.mxu3 }
 0x25c   : > { %v847_v15 = vpop.f32.mrf.mxu0 }
 0x25e   : > { %v828_v16 = vpop.f32.mrf.mxu2 }
 0x25f   : > { %v848_v17 = vadd.f32 %v847_v15, %v828_v16 }
 0x261   : > { %v851_v19 = vmul.f32 %v1123_v18, %v848_v17 }
 0x263   : > { %853 = vrot.lane.b32.xlu1 %v851_v19, %s1196_s26  ;;  %s913_s26 = scalar_lea.hbm %s1486_s12, %s1038_s29 }
 0x264   : > { %v849_v20 = vpop.f32.mrf.mxu0  ;;  %s917_s23 = sshll.u32 %s913_s26, 4  ;;  %s918_s23 = int_to_ptr.hbm [resolvable:$true] %s917_s23 }
 0x265   : > { %s1142_s0 = sshra.s32 %s918_s23, 4  ;;  %s1143_s0 = int_to_ptr.hbm [resolvable:$true] %s1142_s0 }
 0x266   : > { %v830_v21 = vpop.f32.mrf.mxu2  ;;  %s1144_s1 = scalar_lea.hbm %s1143_s0, 8  ;;  %p1149_p0 = scmp.lt.s32.totalorder %s1143_s0, %s1486_s12 }
 0x267   : > { %p1145_p11 = scmp.ne.s32.totalorder %s1143_s0, %s1144_s1  ;;  %p1150_p1 = scmp.lt.s32.totalorder %s1148_s15, %s1144_s1 }
 0x269   : > { %p1146_p12 = pnand %p1145_p11, %p1301_p5  ;;  %p1151_p2 = por %p1150_p1, %p1149_p0 }
 0x26b   : > { %p1147_p13 = pneg %p1146_p12 }
 0x26d   : > { %p1152_p3 = pnand %p1151_p2, %p1147_p13 }
 0x280   : > { %v608_v34 = vpop.xlane.xlu1 %607 }
 0x281   : > { %v620_v26 = vpop.xlane.xlu0 %619 }
 0x282   : > { %v626_v35 = vadd.f32 %v620_v26, %v608_v34 }
 0x289   : > { %v602_v27 = vpop.xlane.xlu0 %601 }
 0x28a   : > { %v624_v29 = vadd.f32 %v614_v28, %v602_v27 }
 0x28b   : > { %v806_v22 = vpop.f32.mrf.mxu1 }
 0x28c   : > { %1124 = vrcp.f32 %v624_v29 }
 0x28d   : > { %1126 = vrcp.f32 %v626_v35 }
 0x292   : > { %v787_v23 = vpop.f32.mrf.mxu3  ;;  %v1125_v30 = vpop.eup %1124 }
 0x293   : > { %v808_v11 = vpop.f32.mrf.mxu1  ;;  %v719_v31 = vmul.f32 %v1125_v30, %v716_v8  ;;  %v807_v25 = vadd.f32 %v806_v22, %v787_v23  ;;  %v1127_v36 = vpop.eup %1126 }
 0x295   : > { %v810_v37 = vmul.f32 %v1127_v36, %v807_v25 }
 0x29a   : > { %v789_v24 = vpop.f32.mrf.mxu3 }
 0x2c3   : > { %v766_v32 = vpop.permute.xlu0 %765 }
 0x2c4   : > { %v768_v33 = vsel %vm559_vm1, %v719_v31, %v766_v32 }
 0x2c5   : > { %769 = vst.msk [vmem:[#allocation2] sm:$0xff] %vm546_vm4, %v768_v33 }
 0x2d5   : > { %v854_v38 = vpop.permute.xlu1 %853 }
 0x2d6   : > { %v856_v39 = vsel %vm559_vm1, %v810_v37, %v854_v38 }
 0x2d7   : > { %858 = vrot.lane.b32.xlu2 %v856_v39, %s1197_s18 }
 0x331   : > { %v859_v42 = vpop.permute.xlu2 %858 }
 0x332   : > { %862 = vst.msk [vmem:[#allocation2] sm:$0xff] %vm861_vm5, %v859_v42 }
 0x339   : > { %v863_v43 = vld [vmem:[#allocation2] sm:$0xff] }
 0x33a   : > { %v864_v44 = vpack.c.bf16 %v863_v43, %v863_v43 }
 0x33c   : > { %1036 = vmatmul.msk.bf16.vlgmr.msrb.gmra.mxu3 %vm505_vm2, %v864_v44 }
 0x3bf   : > { %v897_v46 = vpop.f32.mrf.mxu3 }
 0x3c0   : > { %v898_v47 = vadd.f32 %v1103_v45, %v897_v46 }
 0x3c2   : > { %901 = vst.msk [vmem:[%s406_s30] sm:$0xff] %vm505_vm2, %v898_v47 }
 0x3c3   : > { %1155 = shalt.err (!%p1152_p3)
}
 0x3c4   : > { %1052 = dma.vmem_to_hbm [thread:$0]  (%p1301_p5), %s916_s20, 128, %s918_s23, %s903_s25  }
 0x3c7   : > { %v899_v48 = vpop.f32.mrf.mxu3 }
 0x3c8 PF: > { %p1058_p4 = scmp.ge.s32.totalorder %s1190_s24, 2  ;;  %s929_s28 = sand.u32 1, %s1178_s21  }
 0x3c9   : > { %s930_s18 = scalar_lea.sflag [#allocation4], %s929_s28 }
 0x3ca   : > { %p1055_p7 = pnand %p1058_p4, %p1305_p6 }
 0x3cc   : > { %p1056_p8 = pneg %p1055_p7 }
 0x3ce   : > { %1173 = dma.done.wait (%p1056_p8), %s930_s18, 128  }
 0x3cf   : > { %1175 = vsyncadd (%p1056_p8), %s930_s18, 4294967168  ;;  %s1496_s0 = sld [smem:[#allocation6_spill]]  ;;  %p22_p9 = scmp.ge.s32.totalorder %s1288_s27, 4  }
 0x3d0   : > { %s1497_s23 = sld [smem:[#allocation7_spill]]  ;;  %s1498_s21 = smov %s1182_s22 }
 0x3d1   : > { %s1500_s24 = smov %s1288_s27  ;;  %24 = sbr.rel (!%p22_p9) target bundleno = 6 (0x6), region = 103 }
 0x3d5   : > { %s1499_s22 = smov %s1496_s0 }
 0x3d6   :  { %936 = vsyncpa [#allocation4], 1 }
 0x3d7   :  { %938 = vsyncpa [#allocation4 + $0x1], 1 }

</bundles_post_ra>
